<compile_context>
chip_gen: v7x
topology: tpu7x:2x2x1
jax: 0.10.0
libtpu: 0.0.40
codegen_flags: <defaults>
</compile_context>

<pallas_src>
import functools
import math

import jax
import jax.numpy as jnp
from jax.experimental import pallas as pl
from jax.experimental.pallas import tpu as pltpu


# ----------------------------------------------------------------------------
# Pallas kernel: one (batch-tile, layer) pair per grid step.
# The residual stream is carried in xo_ref (resident output block across layers).
# ----------------------------------------------------------------------------
def encoder_stack_kernel(
    x_ref, mask_ref,
    wqkv_ref, bqkv_ref, wo_ref, bo_ref,
    g1_ref, be1_ref, w1_ref, b1_ref, w2_ref, b2_ref, g2_ref, be2_ref,
    xo_ref, attn_ref,
    ctx_vmem,
    *, Bt, S, H, n_heads, head_dim,
):
    layer = pl.program_id(1)

    # Layer 0 seeds the residual stream for this batch tile; later layers reuse
    # the resident output block.
    @pl.when(layer == 0)
    def _():
        xo_ref[...] = x_ref[...]

    x = xo_ref[...].reshape(Bt * S, H)              # (Bt*S, H) f32 residual stream
    x_bf16 = x.astype(jnp.bfloat16)                 # hoisted cast, reused for QKV

    # Additive mask bias, hoisted out of the head loop (broadcast done once).
    neg_bias = jnp.where(mask_ref[...] == 0.0,
                         jnp.float32(-1e10), jnp.float32(0.0))      # (Bt, 1, S)
    bias_full = jnp.broadcast_to(neg_bias, (Bt, S, S))              # keys bcast over queries

    def layer_norm(v, g_r, b_r):
        mu = jnp.mean(v, axis=-1, keepdims=True)
        var = jnp.mean((v - mu) ** 2, axis=-1, keepdims=True)
        return (v - mu) * jax.lax.rsqrt(var + 1e-5) * g_r[...] + b_r[...]

    # --- multi-head self attention -------------------------------------------
    # Fused QKV projection: one (Bt*S, H) @ (H, 3H) MXU matmul, f32 accumulation.
    qkv = jnp.dot(x_bf16, wqkv_ref[...],
                  preferred_element_type=jnp.float32) + bqkv_ref[...]
    inv_scale = jnp.float32(1.0 / math.sqrt(head_dim))
    q = (qkv[:, :H] * inv_scale).astype(jnp.bfloat16).reshape(Bt, S, H)
    k = qkv[:, H:2 * H].astype(jnp.bfloat16).reshape(Bt, S, H)
    v = qkv[:, 2 * H:].astype(jnp.bfloat16).reshape(Bt, S, H)

    # Small static loop over heads only; batched over the batch tile via einsum.
    for h in range(n_heads):
        c = h * head_dim
        qh = q[:, :, c:c + head_dim]
        kh = k[:, :, c:c + head_dim]
        vh = v[:, :, c:c + head_dim]

        e = jnp.einsum("bqd,bkd->bqk", qh, kh,
                       preferred_element_type=jnp.float32)          # (Bt, S, S)
        e = e + bias_full                                            # masked_fill
        e = e - jnp.max(e, axis=-1, keepdims=True)
        p = jnp.exp(e)
        # Exact reciprocal (EUP): emitted attention rows sum to 1.
        p = p * pl.reciprocal(jnp.sum(p, axis=-1, keepdims=True), approx=False)

        # Head-major bf16 attention maps written straight to the output block.
        attn_ref[:, h:h + 1, :, :] = p.astype(jnp.bfloat16).reshape(Bt, 1, S, S)

        # Per-head context into bf16 scratch (already MXU input dtype for fc_o).
        ctx_vmem[:, :, c:c + head_dim] = jnp.einsum(
            "bqk,bkd->bqd", p.astype(jnp.bfloat16), vh,
            preferred_element_type=jnp.float32).astype(jnp.bfloat16)

    ctx = ctx_vmem[...].reshape(Bt * S, H)                           # bf16
    attn_out = jnp.dot(ctx, wo_ref[...],
                       preferred_element_type=jnp.float32) + bo_ref[...]   # fc_o
    x1 = layer_norm(x + attn_out, g1_ref, be1_ref)                   # self_attn_norm

    # --- position-wise feed-forward -------------------------------------------
    x1_bf16 = x1.astype(jnp.bfloat16)
    h1 = jnp.maximum(jnp.dot(x1_bf16, w1_ref[...],
                             preferred_element_type=jnp.float32) + b1_ref[...],
                     0.0)                                            # relu(fc1)
    ffn = jnp.dot(h1.astype(jnp.bfloat16), w2_ref[...],
                  preferred_element_type=jnp.float32) + b2_ref[...]  # fc2
    x2 = layer_norm(x1 + ffn, g2_ref, be2_ref)                       # ff_norm

    xo_ref[...] = x2.reshape(Bt, S, H)                               # carry / final out


# ----------------------------------------------------------------------------
# One-time parameter preparation (stack layers, fuse QKV, cast matmul weights
# to bf16).  This is intentionally OUTSIDE the forward path.
# ----------------------------------------------------------------------------
def prepare_params(params):
    def stack(name, dtype=None):
        arr = jnp.stack([lp[name] for lp in params["layers"]], axis=0)
        return arr.astype(dtype) if dtype is not None else arr

    mat = jnp.bfloat16
    w_qkv = jnp.concatenate([stack("wq"), stack("wk"), stack("wv")],
                            axis=-1).astype(mat)                     # (L, H, 3H)
    b_qkv = jnp.concatenate([stack("bq"), stack("bk"), stack("bv")], axis=-1)  # (L, 1, 3H)

    return dict(
        tok_emb=params["tok_emb"], pos_emb=params["pos_emb"],
        w_qkv=w_qkv, b_qkv=b_qkv,
        wo=stack("wo", mat), bo=stack("bo"),
        g1=stack("g1"), be1=stack("be1"),
        w1=stack("w1", mat), b1=stack("b1"),
        w2=stack("w2", mat), b2=stack("b2"),
        g2=stack("g2"), be2=stack("be2"),
    )


def _pick_vmem_limit():
    # ~56 MiB on v7x (64 MiB physical/TC), up to 100 MiB on v5e/v6e (128 MiB).
    try:
        cap = pltpu.get_tpu_info().vmem_capacity_bytes
    except Exception:
        cap = 64 * 1024 * 1024
    return int(min(100 * 1024 * 1024, max(32 * 1024 * 1024, cap * 7 // 8)))


# ----------------------------------------------------------------------------
# Wrapper: embedding glue in JAX, full layer stack in ONE pallas_call.
# ----------------------------------------------------------------------------
def encoder_forward(token_ids, mask, prepared, *, n_heads, batch_tile=None):
    B, S = token_ids.shape
    H = prepared["tok_emb"].shape[1]
    L = prepared["w_qkv"].shape[0]
    head_dim = H // n_heads

    # Batch-tile axis: gives v7x's two TensorCores independent work.
    if batch_tile is None:
        batch_tile = B // 2 if (B >= 2 and B % 2 == 0) else B
    assert B % batch_tile == 0
    Bt = batch_tile
    n_bt = B // Bt

    # Embedding gather + scale + positional embedding (dropout = identity).
    pos = jnp.arange(S, dtype=jnp.int32)
    x = jnp.take(prepared["tok_emb"], token_ids, axis=0) * jnp.float32(math.sqrt(H))
    x = x + jnp.take(prepared["pos_emb"], pos, axis=0)[None, :, :]

    order = ("w_qkv", "b_qkv", "wo", "bo", "g1", "be1",
             "w1", "b1", "w2", "b2", "g2", "be2")
    ws = [prepared[n] for n in order]

    def w_spec(arr):
        nd = arr.ndim
        # Leading layer axis squeezed; per-layer weight selected by index_map.
        return pl.BlockSpec((None,) + arr.shape[1:],
                            lambda bt, l: (l,) + (0,) * (nd - 1))

    grid_spec = pltpu.PrefetchScalarGridSpec(
        num_scalar_prefetch=0,
        grid=(n_bt, L),                                   # layer axis innermost
        in_specs=[
            pl.BlockSpec((Bt, S, H), lambda bt, l: (bt, 0, 0)),     # x (per batch tile)
            pl.BlockSpec((Bt, 1, S), lambda bt, l: (bt, 0, 0)),     # mask
        ] + [w_spec(p) for p in ws],
        out_specs=[
            pl.BlockSpec((Bt, S, H), lambda bt, l: (bt, 0, 0)),     # resident residual carry
            pl.BlockSpec((None, Bt, n_heads, S, S),
                         lambda bt, l: (l, bt, 0, 0, 0)),           # bf16 attn maps
        ],
        scratch_shapes=[
            pltpu.VMEM((Bt, S, H), jnp.bfloat16),                   # bf16 ctx scratch
        ],
    )

    kernel = functools.partial(encoder_stack_kernel,
                               Bt=Bt, S=S, H=H, n_heads=n_heads, head_dim=head_dim)

    x_out, attn_all = pl.pallas_call(
        kernel,
        grid_spec=grid_spec,
        out_shape=(
            jax.ShapeDtypeStruct((B, S, H), jnp.float32),
            jax.ShapeDtypeStruct((L, B, n_heads, S, S), jnp.bfloat16),
        ),
        compiler_params=pltpu.CompilerParams(
            dimension_semantics=("parallel", "arbitrary"),   # batch tiles || , layers sequential
            vmem_limit_bytes=_pick_vmem_limit(),
        ),
    )(x, mask, *ws)

    # Already head-major (torch layout); just unstack the layer axis.
    attn_list = [attn_all[i] for i in range(L)]
    return x_out, attn_list


# ----------------------------------------------------------------------------
# Pure-JAX f32 reference (numerical sanity check).
# ----------------------------------------------------------------------------
def encoder_forward_ref(token_ids, mask, params, *, n_heads):
    B, S = token_ids.shape
    H = params["tok_emb"].shape[1]
    head_dim = H // n_heads
    x = jnp.take(params["tok_emb"], token_ids, axis=0) * jnp.float32(math.sqrt(H))
    x = x + params["pos_emb"][None, :S, :]
    attn_list = []
    for lp in params["layers"]:
        def lin(v, w, b):
            return v @ w + b
        q = lin(x, lp["wq"], lp["bq"]).reshape(B, S, n_heads, head_dim).transpose(0, 2, 1, 3)
        k = lin(x, lp["wk"], lp["bk"]).reshape(B, S, n_heads, head_dim).transpose(0, 2, 1, 3)
        v = lin(x, lp["wv"], lp["bv"]).reshape(B, S, n_heads, head_dim).transpose(0, 2, 1, 3)
        e = jnp.einsum("bhqd,bhkd->bhqk", q, k) / math.sqrt(head_dim)
        e = jnp.where(mask[:, None, :, :] == 0.0, -1e10, e)
        attn = jax.nn.softmax(e, axis=-1)
        ctx = jnp.einsum("bhqk,bhkd->bhqd", attn, v).transpose(0, 2, 1, 3).reshape(B, S, H)
        ao = lin(ctx, lp["wo"], lp["bo"])

        def ln(vv, g, b):
            mu = jnp.mean(vv, -1, keepdims=True)
            var = jnp.mean((vv - mu) ** 2, -1, keepdims=True)
            return (vv - mu) * jax.lax.rsqrt(var + 1e-5) * g + b

        x1 = ln(x + ao, lp["g1"], lp["be1"])
        ffn = lin(jnp.maximum(lin(x1, lp["w1"], lp["b1"]), 0.0), lp["w2"], lp["b2"])
        x = ln(x1 + ffn, lp["g2"], lp["be2"])
        attn_list.append(attn)
    return x, attn_list


# ----------------------------------------------------------------------------
# Deterministic parameter init (mimics the torch module's shapes).
# ----------------------------------------------------------------------------
def init_params(key, inp_dim, hid_dim, pf_dim, n_layers, max_len):
    keys = jax.random.split(key, 2 + n_layers)
    params = {
        "tok_emb": 0.02 * jax.random.normal(keys[0], (inp_dim, hid_dim), jnp.float32),
        "pos_emb": 0.02 * jax.random.normal(keys[1], (max_len, hid_dim), jnp.float32),
        "layers": [],
    }

    def lin_init(k, din, dout):
        kb1, kb2 = jax.random.split(k)
        bound = 1.0 / math.sqrt(din)
        w = jax.random.uniform(kb1, (din, dout), jnp.float32, -bound, bound)
        b = jax.random.uniform(kb2, (1, dout), jnp.float32, -bound, bound)
        return w, b

    for i in range(n_layers):
        lk = jax.random.split(keys[2 + i], 6)
        wq, bq = lin_init(lk[0], hid_dim, hid_dim)
        wk, bk = lin_init(lk[1], hid_dim, hid_dim)
        wv, bv = lin_init(lk[2], hid_dim, hid_dim)
        wo, bo = lin_init(lk[3], hid_dim, hid_dim)
        w1, b1 = lin_init(lk[4], hid_dim, pf_dim)
        w2, b2 = lin_init(lk[5], pf_dim, hid_dim)
        params["layers"].append(dict(
            wq=wq, bq=bq, wk=wk, bk=bk, wv=wv, bv=bv, wo=wo, bo=bo,
            g1=jnp.ones((1, hid_dim), jnp.float32), be1=jnp.zeros((1, hid_dim), jnp.float32),
            w1=w1, b1=b1, w2=w2, b2=b2,
            g2=jnp.ones((1, hid_dim), jnp.float32), be2=jnp.zeros((1, hid_dim), jnp.float32),
        ))
    return params


if __name__ == "__main__":
    # Small shapes: batch=2, seq=8, hidden=32, heads=4, pf_dim=64, 2 layers.
    B, S = 2, 8
    INP_DIM, HID_DIM, PF_DIM = 50, 32, 64
    N_LAYERS, N_HEADS, MAX_LEN = 2, 4, 16

    key = jax.random.PRNGKey(0)
    k_tok, k_par = jax.random.split(key)

    token_ids = jax.random.randint(k_tok, (B, S), 0, INP_DIM, dtype=jnp.int32)
    # mask: (B, 1, S), 1 = attend, 0 = masked (padding); broadcast over heads & queries.
    lengths = jnp.array([S, 5], dtype=jnp.int32)
    mask = (jnp.arange(S)[None, :] < lengths[:, None]).astype(jnp.float32)[:, None, :]

    params = init_params(k_par, INP_DIM, HID_DIM, PF_DIM, N_LAYERS, MAX_LEN)
    prepared = prepare_params(params)            # one-time stack/fuse/cast (not per call)

    x_out, attn_list = encoder_forward(token_ids, mask, prepared, n_heads=N_HEADS)
    x_out = jax.block_until_ready(x_out)
    attn_list = [jax.block_until_ready(a) for a in attn_list]

    # Numerical sanity check against pure-f32 JAX reference.
    x_ref, attn_ref_list = encoder_forward_ref(token_ids, mask, params, n_heads=N_HEADS)
    assert x_out.shape == (B, S, HID_DIM)
    assert all(a.shape == (B, N_HEADS, S, S) for a in attn_list)
    assert jnp.all(jnp.isfinite(x_out))
    # bf16 MXU inputs -> slightly looser tolerance than pure f32.
    assert jnp.allclose(x_out, x_ref, atol=5e-2, rtol=5e-2)
    for a, ar in zip(attn_list, attn_ref_list):
        a32 = a.astype(jnp.float32)
        assert jnp.allclose(a32, ar, atol=2e-2, rtol=2e-2)
        assert jnp.allclose(jnp.sum(a32, axis=-1), 1.0, atol=1e-2)

    print("KERNEL_OK")
</pallas_src>

<mosaic_0001>
module attributes {stable_mosaic.version = 11 : i64} {
  func.func @encoder_stack_kernel(%arg0: i32, %arg1: i32, %arg2: memref<1x8x32xf32, #tpu.memory_space<vmem>>, %arg3: memref<1x1x8xf32, #tpu.memory_space<vmem>>, %arg4: memref<1x32x96xbf16, #tpu.memory_space<vmem>>, %arg5: memref<1x1x96xf32, #tpu.memory_space<vmem>>, %arg6: memref<1x32x32xbf16, #tpu.memory_space<vmem>>, %arg7: memref<1x1x32xf32, #tpu.memory_space<vmem>>, %arg8: memref<1x1x32xf32, #tpu.memory_space<vmem>>, %arg9: memref<1x1x32xf32, #tpu.memory_space<vmem>>, %arg10: memref<1x32x64xbf16, #tpu.memory_space<vmem>>, %arg11: memref<1x1x64xf32, #tpu.memory_space<vmem>>, %arg12: memref<1x64x32xbf16, #tpu.memory_space<vmem>>, %arg13: memref<1x1x32xf32, #tpu.memory_space<vmem>>, %arg14: memref<1x1x32xf32, #tpu.memory_space<vmem>>, %arg15: memref<1x1x32xf32, #tpu.memory_space<vmem>>, %arg16: memref<1x8x32xf32, #tpu.memory_space<vmem>>, %arg17: memref<1x1x4x8x8xbf16, #tpu.memory_space<vmem>>, %arg18: memref<1x8x32xbf16, #tpu.memory_space<vmem>>) attributes {dimension_semantics = [#tpu.dimension_semantics<parallel>, #tpu.dimension_semantics<arbitrary>], iteration_bounds = array<i64: 2, 2>, scalar_prefetch = 0 : i64, scratch_operands = 1 : i64, tpu.core_type = #tpu.core_type<tc>, window_params = [{transform_indices = @transform_0, window_bounds = array<i64: 1, 8, 32>}, {transform_indices = @transform_1, window_bounds = array<i64: 1, 1, 8>}, {transform_indices = @transform_2, window_bounds = array<i64: 1, 32, 96>}, {transform_indices = @transform_3, window_bounds = array<i64: 1, 1, 96>}, {transform_indices = @transform_4, window_bounds = array<i64: 1, 32, 32>}, {transform_indices = @transform_5, window_bounds = array<i64: 1, 1, 32>}, {transform_indices = @transform_6, window_bounds = array<i64: 1, 1, 32>}, {transform_indices = @transform_7, window_bounds = array<i64: 1, 1, 32>}, {transform_indices = @transform_8, window_bounds = array<i64: 1, 32, 64>}, {transform_indices = @transform_9, window_bounds = array<i64: 1, 1, 64>}, {transform_indices = @transform_10, window_bounds = array<i64: 1, 64, 32>}, {transform_indices = @transform_11, window_bounds = array<i64: 1, 1, 32>}, {transform_indices = @transform_12, window_bounds = array<i64: 1, 1, 32>}, {transform_indices = @transform_13, window_bounds = array<i64: 1, 1, 32>}, {transform_indices = @transform_14, window_bounds = array<i64: 1, 8, 32>}, {transform_indices = @transform_15, window_bounds = array<i64: 1, 1, 4, 8, 8>}]} {
    %c0_i32 = arith.constant 0 : i32
    %0 = arith.cmpi eq, %arg1, %c0_i32 : i32
    %1 = arith.extui %0 : i1 to i32
    %c0_i32_0 = arith.constant 0 : i32
    %2 = arith.cmpi ne, %1, %c0_i32_0 : i32
    scf.if %2 {
      %c0_108 = arith.constant 0 : index
      %c0_109 = arith.constant 0 : index
      %c0_110 = arith.constant 0 : index
      %211 = vector.load %arg2[%c0_108, %c0_109, %c0_110] : memref<1x8x32xf32, #tpu.memory_space<vmem>>, vector<1x8x32xf32>
      %c0_111 = arith.constant 0 : index
      %c0_112 = arith.constant 0 : index
      %c0_113 = arith.constant 0 : index
      %212 = vector.load %arg16[%c0_111, %c0_112, %c0_113] : memref<1x8x32xf32, #tpu.memory_space<vmem>>, vector<1x8x32xf32>
      tpu.vector_store %arg16[%c0_111, %c0_112, %c0_113], %211 {strides = array<i32>} : memref<1x8x32xf32, #tpu.memory_space<vmem>>, vector<1x8x32xf32>,
    } else {
    }
    %c0 = arith.constant 0 : index
    %c0_1 = arith.constant 0 : index
    %c0_2 = arith.constant 0 : index
    %3 = vector.load %arg16[%c0, %c0_1, %c0_2] : memref<1x8x32xf32, #tpu.memory_space<vmem>>, vector<1x8x32xf32>
    %4 = vector.shape_cast %3 : vector<1x8x32xf32> to vector<8x32xf32>
    %5 = arith.truncf %4 : vector<8x32xf32> to vector<8x32xbf16>
    %c0_3 = arith.constant 0 : index
    %c0_4 = arith.constant 0 : index
    %c0_5 = arith.constant 0 : index
    %6 = vector.load %arg3[%c0_3, %c0_4, %c0_5] : memref<1x1x8xf32, #tpu.memory_space<vmem>>, vector<1x1x8xf32>
    %cst = arith.constant 0.000000e+00 : f32
    %7 = vector.broadcast %cst : f32 to vector<1x1x8xf32>
    %8 = arith.cmpf oeq, %6, %7 : vector<1x1x8xf32>
    %cst_6 = arith.constant -1.000000e+10 : f32
    %cst_7 = arith.constant 0.000000e+00 : f32
    %9 = vector.broadcast %cst_6 : f32 to vector<1x1x8xf32>
    %10 = vector.broadcast %cst_7 : f32 to vector<1x1x8xf32>
    %11 = arith.select %8, %9, %10 : vector<1x1x8xi1>, vector<1x1x8xf32>
    %12 = vector.shape_cast %11 : vector<1x1x8xf32> to vector<1x1x8xf32>
    %13 = vector.broadcast %12 : vector<1x1x8xf32> to vector<1x8x8xf32>
    %c0_8 = arith.constant 0 : index
    %c0_9 = arith.constant 0 : index
    %c0_10 = arith.constant 0 : index
    %14 = vector.load %arg4[%c0_8, %c0_9, %c0_10] : memref<1x32x96xbf16, #tpu.memory_space<vmem>>, vector<1x32x96xbf16>
    %15 = vector.shape_cast %14 : vector<1x32x96xbf16> to vector<32x96xbf16>
    %cst_11 = arith.constant dense<0.000000e+00> : vector<8x96xf32>
    %16 = tpu.matmul %5, %15, %cst_11 {dimension_numbers = #tpu.dot_dimension_numbers<[1], [0], [0], [1], [0, 0, 1, 1], [], []>} : vector<8x32xbf16>, vector<32x96xbf16>, vector<8x96xf32> -> vector<8x96xf32>
    %c0_12 = arith.constant 0 : index
    %c0_13 = arith.constant 0 : index
    %c0_14 = arith.constant 0 : index
    %17 = vector.load %arg5[%c0_12, %c0_13, %c0_14] : memref<1x1x96xf32, #tpu.memory_space<vmem>>, vector<1x1x96xf32>
    %18 = vector.shape_cast %17 : vector<1x1x96xf32> to vector<1x96xf32>
    %19 = vector.broadcast %18 : vector<1x96xf32> to vector<8x96xf32>
    %20 = arith.addf %16, %19 : vector<8x96xf32>
    %21 = vector.extract_strided_slice %20 {offsets = [0, 0], sizes = [8, 32], strides = [1, 1]} : vector<8x96xf32> to vector<8x32xf32>
    %cst_15 = arith.constant 0.353553385 : f32
    %22 = vector.broadcast %cst_15 : f32 to vector<8x32xf32>
    %23 = arith.mulf %21, %22 : vector<8x32xf32>
    %24 = arith.truncf %23 : vector<8x32xf32> to vector<8x32xbf16>
    %25 = vector.shape_cast %24 : vector<8x32xbf16> to vector<1x8x32xbf16>
    %26 = vector.extract_strided_slice %20 {offsets = [0, 32], sizes = [8, 32], strides = [1, 1]} : vector<8x96xf32> to vector<8x32xf32>
    %27 = arith.truncf %26 : vector<8x32xf32> to vector<8x32xbf16>
    %28 = vector.shape_cast %27 : vector<8x32xbf16> to vector<1x8x32xbf16>
    %29 = vector.extract_strided_slice %20 {offsets = [0, 64], sizes = [8, 32], strides = [1, 1]} : vector<8x96xf32> to vector<8x32xf32>
    %30 = arith.truncf %29 : vector<8x32xf32> to vector<8x32xbf16>
    %31 = vector.shape_cast %30 : vector<8x32xbf16> to vector<1x8x32xbf16>
    %32 = vector.extract_strided_slice %25 {offsets = [0, 0, 0], sizes = [1, 8, 8], strides = [1, 1, 1]} : vector<1x8x32xbf16> to vector<1x8x8xbf16>
    %33 = vector.extract_strided_slice %28 {offsets = [0, 0, 0], sizes = [1, 8, 8], strides = [1, 1, 1]} : vector<1x8x32xbf16> to vector<1x8x8xbf16>
    %34 = vector.extract_strided_slice %31 {offsets = [0, 0, 0], sizes = [1, 8, 8], strides = [1, 1, 1]} : vector<1x8x32xbf16> to vector<1x8x8xbf16>
    "tpu.trace_start"() <{level = 10 : i32, message = "bqd,bkd->bqk"}> : () -> ()
    %cst_16 = arith.constant dense<0.000000e+00> : vector<1x8x8xf32>
    %35 = tpu.matmul %32, %33, %cst_16 {dimension_numbers = #tpu.dot_dimension_numbers<[2], [2], [1], [1], [0, 0, 0, 1, 1, 1], [0], [0]>} : vector<1x8x8xbf16>, vector<1x8x8xbf16>, vector<1x8x8xf32> -> vector<1x8x8xf32>
    "tpu.trace_stop"() : () -> ()
    %36 = arith.addf %35, %13 : vector<1x8x8xf32>
    %cst_17 = arith.constant dense<0xFF800000> : vector<1x8xf32>
    %37 = vector.multi_reduction <maximumf>, %36, %cst_17 [2] : vector<1x8x8xf32> to vector<1x8xf32>
    %38 = vector.shape_cast %37 : vector<1x8xf32> to vector<1x8x1xf32>
    %39 = vector.broadcast %38 : vector<1x8x1xf32> to vector<1x8x8xf32>
    %40 = arith.subf %36, %39 : vector<1x8x8xf32>
    %41 = math.exp %40 : vector<1x8x8xf32>
    %cst_18 = arith.constant dense<0.000000e+00> : vector<1x8xf32>
    %42 = vector.multi_reduction <add>, %41, %cst_18 [2] : vector<1x8x8xf32> to vector<1x8xf32>
    %43 = vector.shape_cast %42 : vector<1x8xf32> to vector<1x8x1xf32>
    %44 = tpu.reciprocal %43 : vector<1x8x1xf32> -> vector<1x8x1xf32>
    %45 = vector.broadcast %44 : vector<1x8x1xf32> to vector<1x8x8xf32>
    %46 = arith.mulf %41, %45 : vector<1x8x8xf32>
    %47 = arith.truncf %46 : vector<1x8x8xf32> to vector<1x8x8xbf16>
    %48 = vector.shape_cast %47 : vector<1x8x8xbf16> to vector<1x1x8x8xbf16>
    %c0_19 = arith.constant 0 : index
    %c0_20 = arith.constant 0 : index
    %c0_21 = arith.constant 0 : index
    %c0_22 = arith.constant 0 : index
    %c0_23 = arith.constant 0 : index
    %49 = vector.load %arg17[%c0_19, %c0_20, %c0_21, %c0_22, %c0_23] : memref<1x1x4x8x8xbf16, #tpu.memory_space<vmem>>, vector<1x1x1x8x8xbf16>
    %50 = vector.shape_cast %49 : vector<1x1x1x8x8xbf16> to vector<1x1x8x8xbf16>
    %51 = vector.shape_cast %48 : vector<1x1x8x8xbf16> to vector<1x1x1x8x8xbf16>
    tpu.vector_store %arg17[%c0_19, %c0_20, %c0_21, %c0_22, %c0_23], %51 {strides = array<i32>} : memref<1x1x4x8x8xbf16, #tpu.memory_space<vmem>>, vector<1x1x1x8x8xbf16>,
    %52 = arith.truncf %46 : vector<1x8x8xf32> to vector<1x8x8xbf16>
    "tpu.trace_start"() <{level = 10 : i32, message = "bqk,bkd->bqd"}> : () -> ()
    %cst_24 = arith.constant dense<0.000000e+00> : vector<1x8x8xf32>
    %53 = tpu.matmul %52, %34, %cst_24 {dimension_numbers = #tpu.dot_dimension_numbers<[2], [1], [1], [2], [0, 0, 0, 1, 1, 2], [0], [0]>} : vector<1x8x8xbf16>, vector<1x8x8xbf16>, vector<1x8x8xf32> -> vector<1x8x8xf32>
    "tpu.trace_stop"() : () -> ()
    %54 = arith.truncf %53 : vector<1x8x8xf32> to vector<1x8x8xbf16>
    %c0_25 = arith.constant 0 : index
    %c0_26 = arith.constant 0 : index
    %c0_27 = arith.constant 0 : index
    %55 = vector.load %arg18[%c0_25, %c0_26, %c0_27] : memref<1x8x32xbf16, #tpu.memory_space<vmem>>, vector<1x8x8xbf16>
    tpu.vector_store %arg18[%c0_25, %c0_26, %c0_27], %54 {strides = array<i32>} : memref<1x8x32xbf16, #tpu.memory_space<vmem>>, vector<1x8x8xbf16>,
    %56 = vector.extract_strided_slice %25 {offsets = [0, 0, 8], sizes = [1, 8, 8], strides = [1, 1, 1]} : vector<1x8x32xbf16> to vector<1x8x8xbf16>
    %57 = vector.extract_strided_slice %28 {offsets = [0, 0, 8], sizes = [1, 8, 8], strides = [1, 1, 1]} : vector<1x8x32xbf16> to vector<1x8x8xbf16>
    %58 = vector.extract_strided_slice %31 {offsets = [0, 0, 8], sizes = [1, 8, 8], strides = [1, 1, 1]} : vector<1x8x32xbf16> to vector<1x8x8xbf16>
    "tpu.trace_start"() <{level = 10 : i32, message = "bqd,bkd->bqk"}> : () -> ()
    %cst_28 = arith.constant dense<0.000000e+00> : vector<1x8x8xf32>
    %59 = tpu.matmul %56, %57, %cst_28 {dimension_numbers = #tpu.dot_dimension_numbers<[2], [2], [1], [1], [0, 0, 0, 1, 1, 1], [0], [0]>} : vector<1x8x8xbf16>, vector<1x8x8xbf16>, vector<1x8x8xf32> -> vector<1x8x8xf32>
    "tpu.trace_stop"() : () -> ()
    %60 = arith.addf %59, %13 : vector<1x8x8xf32>
    %cst_29 = arith.constant dense<0xFF800000> : vector<1x8xf32>
    %61 = vector.multi_reduction <maximumf>, %60, %cst_29 [2] : vector<1x8x8xf32> to vector<1x8xf32>
    %62 = vector.shape_cast %61 : vector<1x8xf32> to vector<1x8x1xf32>
    %63 = vector.broadcast %62 : vector<1x8x1xf32> to vector<1x8x8xf32>
    %64 = arith.subf %60, %63 : vector<1x8x8xf32>
    %65 = math.exp %64 : vector<1x8x8xf32>
    %cst_30 = arith.constant dense<0.000000e+00> : vector<1x8xf32>
    %66 = vector.multi_reduction <add>, %65, %cst_30 [2] : vector<1x8x8xf32> to vector<1x8xf32>
    %67 = vector.shape_cast %66 : vector<1x8xf32> to vector<1x8x1xf32>
    %68 = tpu.reciprocal %67 : vector<1x8x1xf32> -> vector<1x8x1xf32>
    %69 = vector.broadcast %68 : vector<1x8x1xf32> to vector<1x8x8xf32>
    %70 = arith.mulf %65, %69 : vector<1x8x8xf32>
    %71 = arith.truncf %70 : vector<1x8x8xf32> to vector<1x8x8xbf16>
    %72 = vector.shape_cast %71 : vector<1x8x8xbf16> to vector<1x1x8x8xbf16>
    %c0_31 = arith.constant 0 : index
    %c0_32 = arith.constant 0 : index
    %c1 = arith.constant 1 : index
    %c0_33 = arith.constant 0 : index
    %c0_34 = arith.constant 0 : index
    %73 = vector.load %arg17[%c0_31, %c0_32, %c1, %c0_33, %c0_34] : memref<1x1x4x8x8xbf16, #tpu.memory_space<vmem>>, vector<1x1x1x8x8xbf16>
    %74 = vector.shape_cast %73 : vector<1x1x1x8x8xbf16> to vector<1x1x8x8xbf16>
    %75 = vector.shape_cast %72 : vector<1x1x8x8xbf16> to vector<1x1x1x8x8xbf16>
    tpu.vector_store %arg17[%c0_31, %c0_32, %c1, %c0_33, %c0_34], %75 {strides = array<i32>} : memref<1x1x4x8x8xbf16, #tpu.memory_space<vmem>>, vector<1x1x1x8x8xbf16>,
    %76 = arith.truncf %70 : vector<1x8x8xf32> to vector<1x8x8xbf16>
    "tpu.trace_start"() <{level = 10 : i32, message = "bqk,bkd->bqd"}> : () -> ()
    %cst_35 = arith.constant dense<0.000000e+00> : vector<1x8x8xf32>
    %77 = tpu.matmul %76, %58, %cst_35 {dimension_numbers = #tpu.dot_dimension_numbers<[2], [1], [1], [2], [0, 0, 0, 1, 1, 2], [0], [0]>} : vector<1x8x8xbf16>, vector<1x8x8xbf16>, vector<1x8x8xf32> -> vector<1x8x8xf32>
    "tpu.trace_stop"() : () -> ()
    %78 = arith.truncf %77 : vector<1x8x8xf32> to vector<1x8x8xbf16>
    %c0_36 = arith.constant 0 : index
    %c0_37 = arith.constant 0 : index
    %c8 = arith.constant 8 : index
    %79 = vector.load %arg18[%c0_36, %c0_37, %c8] : memref<1x8x32xbf16, #tpu.memory_space<vmem>>, vector<1x8x8xbf16>
    tpu.vector_store %arg18[%c0_36, %c0_37, %c8], %78 {strides = array<i32>} : memref<1x8x32xbf16, #tpu.memory_space<vmem>>, vector<1x8x8xbf16>,
    %80 = vector.extract_strided_slice %25 {offsets = [0, 0, 16], sizes = [1, 8, 8], strides = [1, 1, 1]} : vector<1x8x32xbf16> to vector<1x8x8xbf16>
    %81 = vector.extract_strided_slice %28 {offsets = [0, 0, 16], sizes = [1, 8, 8], strides = [1, 1, 1]} : vector<1x8x32xbf16> to vector<1x8x8xbf16>
    %82 = vector.extract_strided_slice %31 {offsets = [0, 0, 16], sizes = [1, 8, 8], strides = [1, 1, 1]} : vector<1x8x32xbf16> to vector<1x8x8xbf16>
    "tpu.trace_start"() <{level = 10 : i32, message = "bqd,bkd->bqk"}> : () -> ()
    %cst_38 = arith.constant dense<0.000000e+00> : vector<1x8x8xf32>
    %83 = tpu.matmul %80, %81, %cst_38 {dimension_numbers = #tpu.dot_dimension_numbers<[2], [2], [1], [1], [0, 0, 0, 1, 1, 1], [0], [0]>} : vector<1x8x8xbf16>, vector<1x8x8xbf16>, vector<1x8x8xf32> -> vector<1x8x8xf32>
    "tpu.trace_stop"() : () -> ()
    %84 = arith.addf %83, %13 : vector<1x8x8xf32>
    %cst_39 = arith.constant dense<0xFF800000> : vector<1x8xf32>
    %85 = vector.multi_reduction <maximumf>, %84, %cst_39 [2] : vector<1x8x8xf32> to vector<1x8xf32>
    %86 = vector.shape_cast %85 : vector<1x8xf32> to vector<1x8x1xf32>
    %87 = vector.broadcast %86 : vector<1x8x1xf32> to vector<1x8x8xf32>
    %88 = arith.subf %84, %87 : vector<1x8x8xf32>
    %89 = math.exp %88 : vector<1x8x8xf32>
    %cst_40 = arith.constant dense<0.000000e+00> : vector<1x8xf32>
    %90 = vector.multi_reduction <add>, %89, %cst_40 [2] : vector<1x8x8xf32> to vector<1x8xf32>
    %91 = vector.shape_cast %90 : vector<1x8xf32> to vector<1x8x1xf32>
    %92 = tpu.reciprocal %91 : vector<1x8x1xf32> -> vector<1x8x1xf32>
    %93 = vector.broadcast %92 : vector<1x8x1xf32> to vector<1x8x8xf32>
    %94 = arith.mulf %89, %93 : vector<1x8x8xf32>
    %95 = arith.truncf %94 : vector<1x8x8xf32> to vector<1x8x8xbf16>
    %96 = vector.shape_cast %95 : vector<1x8x8xbf16> to vector<1x1x8x8xbf16>
    %c0_41 = arith.constant 0 : index
    %c0_42 = arith.constant 0 : index
    %c2 = arith.constant 2 : index
    %c0_43 = arith.constant 0 : index
    %c0_44 = arith.constant 0 : index
    %97 = vector.load %arg17[%c0_41, %c0_42, %c2, %c0_43, %c0_44] : memref<1x1x4x8x8xbf16, #tpu.memory_space<vmem>>, vector<1x1x1x8x8xbf16>
    %98 = vector.shape_cast %97 : vector<1x1x1x8x8xbf16> to vector<1x1x8x8xbf16>
    %99 = vector.shape_cast %96 : vector<1x1x8x8xbf16> to vector<1x1x1x8x8xbf16>
    tpu.vector_store %arg17[%c0_41, %c0_42, %c2, %c0_43, %c0_44], %99 {strides = array<i32>} : memref<1x1x4x8x8xbf16, #tpu.memory_space<vmem>>, vector<1x1x1x8x8xbf16>,
    %100 = arith.truncf %94 : vector<1x8x8xf32> to vector<1x8x8xbf16>
    "tpu.trace_start"() <{level = 10 : i32, message = "bqk,bkd->bqd"}> : () -> ()
    %cst_45 = arith.constant dense<0.000000e+00> : vector<1x8x8xf32>
    %101 = tpu.matmul %100, %82, %cst_45 {dimension_numbers = #tpu.dot_dimension_numbers<[2], [1], [1], [2], [0, 0, 0, 1, 1, 2], [0], [0]>} : vector<1x8x8xbf16>, vector<1x8x8xbf16>, vector<1x8x8xf32> -> vector<1x8x8xf32>
    "tpu.trace_stop"() : () -> ()
    %102 = arith.truncf %101 : vector<1x8x8xf32> to vector<1x8x8xbf16>
    %c0_46 = arith.constant 0 : index
    %c0_47 = arith.constant 0 : index
    %c16 = arith.constant 16 : index
    %103 = vector.load %arg18[%c0_46, %c0_47, %c16] : memref<1x8x32xbf16, #tpu.memory_space<vmem>>, vector<1x8x8xbf16>
    tpu.vector_store %arg18[%c0_46, %c0_47, %c16], %102 {strides = array<i32>} : memref<1x8x32xbf16, #tpu.memory_space<vmem>>, vector<1x8x8xbf16>,
    %104 = vector.extract_strided_slice %25 {offsets = [0, 0, 24], sizes = [1, 8, 8], strides = [1, 1, 1]} : vector<1x8x32xbf16> to vector<1x8x8xbf16>
    %105 = vector.extract_strided_slice %28 {offsets = [0, 0, 24], sizes = [1, 8, 8], strides = [1, 1, 1]} : vector<1x8x32xbf16> to vector<1x8x8xbf16>
    %106 = vector.extract_strided_slice %31 {offsets = [0, 0, 24], sizes = [1, 8, 8], strides = [1, 1, 1]} : vector<1x8x32xbf16> to vector<1x8x8xbf16>
    "tpu.trace_start"() <{level = 10 : i32, message = "bqd,bkd->bqk"}> : () -> ()
    %cst_48 = arith.constant dense<0.000000e+00> : vector<1x8x8xf32>
    %107 = tpu.matmul %104, %105, %cst_48 {dimension_numbers = #tpu.dot_dimension_numbers<[2], [2], [1], [1], [0, 0, 0, 1, 1, 1], [0], [0]>} : vector<1x8x8xbf16>, vector<1x8x8xbf16>, vector<1x8x8xf32> -> vector<1x8x8xf32>
    "tpu.trace_stop"() : () -> ()
    %108 = arith.addf %107, %13 : vector<1x8x8xf32>
    %cst_49 = arith.constant dense<0xFF800000> : vector<1x8xf32>
    %109 = vector.multi_reduction <maximumf>, %108, %cst_49 [2] : vector<1x8x8xf32> to vector<1x8xf32>
    %110 = vector.shape_cast %109 : vector<1x8xf32> to vector<1x8x1xf32>
    %111 = vector.broadcast %110 : vector<1x8x1xf32> to vector<1x8x8xf32>
    %112 = arith.subf %108, %111 : vector<1x8x8xf32>
    %113 = math.exp %112 : vector<1x8x8xf32>
    %cst_50 = arith.constant dense<0.000000e+00> : vector<1x8xf32>
    %114 = vector.multi_reduction <add>, %113, %cst_50 [2] : vector<1x8x8xf32> to vector<1x8xf32>
    %115 = vector.shape_cast %114 : vector<1x8xf32> to vector<1x8x1xf32>
    %116 = tpu.reciprocal %115 : vector<1x8x1xf32> -> vector<1x8x1xf32>
    %117 = vector.broadcast %116 : vector<1x8x1xf32> to vector<1x8x8xf32>
    %118 = arith.mulf %113, %117 : vector<1x8x8xf32>
    %119 = arith.truncf %118 : vector<1x8x8xf32> to vector<1x8x8xbf16>
    %120 = vector.shape_cast %119 : vector<1x8x8xbf16> to vector<1x1x8x8xbf16>
    %c0_51 = arith.constant 0 : index
    %c0_52 = arith.constant 0 : index
    %c3 = arith.constant 3 : index
    %c0_53 = arith.constant 0 : index
    %c0_54 = arith.constant 0 : index
    %121 = vector.load %arg17[%c0_51, %c0_52, %c3, %c0_53, %c0_54] : memref<1x1x4x8x8xbf16, #tpu.memory_space<vmem>>, vector<1x1x1x8x8xbf16>
    %122 = vector.shape_cast %121 : vector<1x1x1x8x8xbf16> to vector<1x1x8x8xbf16>
    %123 = vector.shape_cast %120 : vector<1x1x8x8xbf16> to vector<1x1x1x8x8xbf16>
    tpu.vector_store %arg17[%c0_51, %c0_52, %c3, %c0_53, %c0_54], %123 {strides = array<i32>} : memref<1x1x4x8x8xbf16, #tpu.memory_space<vmem>>, vector<1x1x1x8x8xbf16>,
    %124 = arith.truncf %118 : vector<1x8x8xf32> to vector<1x8x8xbf16>
    "tpu.trace_start"() <{level = 10 : i32, message = "bqk,bkd->bqd"}> : () -> ()
    %cst_55 = arith.constant dense<0.000000e+00> : vector<1x8x8xf32>
    %125 = tpu.matmul %124, %106, %cst_55 {dimension_numbers = #tpu.dot_dimension_numbers<[2], [1], [1], [2], [0, 0, 0, 1, 1, 2], [0], [0]>} : vector<1x8x8xbf16>, vector<1x8x8xbf16>, vector<1x8x8xf32> -> vector<1x8x8xf32>
    "tpu.trace_stop"() : () -> ()
    %126 = arith.truncf %125 : vector<1x8x8xf32> to vector<1x8x8xbf16>
    %c0_56 = arith.constant 0 : index
    %c0_57 = arith.constant 0 : index
    %c24 = arith.constant 24 : index
    %127 = vector.load %arg18[%c0_56, %c0_57, %c24] : memref<1x8x32xbf16, #tpu.memory_space<vmem>>, vector<1x8x8xbf16>
    tpu.vector_store %arg18[%c0_56, %c0_57, %c24], %126 {strides = array<i32>} : memref<1x8x32xbf16, #tpu.memory_space<vmem>>, vector<1x8x8xbf16>,
    %c0_58 = arith.constant 0 : index
    %c0_59 = arith.constant 0 : index
    %c0_60 = arith.constant 0 : index
    %128 = vector.load %arg18[%c0_58, %c0_59, %c0_60] : memref<1x8x32xbf16, #tpu.memory_space<vmem>>, vector<1x8x32xbf16>
    %129 = vector.shape_cast %128 : vector<1x8x32xbf16> to vector<8x32xbf16>
    %c0_61 = arith.constant 0 : index
    %c0_62 = arith.constant 0 : index
    %c0_63 = arith.constant 0 : index
    %130 = vector.load %arg6[%c0_61, %c0_62, %c0_63] : memref<1x32x32xbf16, #tpu.memory_space<vmem>>, vector<1x32x32xbf16>
    %131 = vector.shape_cast %130 : vector<1x32x32xbf16> to vector<32x32xbf16>
    %cst_64 = arith.constant dense<0.000000e+00> : vector<8x32xf32>
    %132 = tpu.matmul %129, %131, %cst_64 {dimension_numbers = #tpu.dot_dimension_numbers<[1], [0], [0], [1], [0, 0, 1, 1], [], []>} : vector<8x32xbf16>, vector<32x32xbf16>, vector<8x32xf32> -> vector<8x32xf32>
    %c0_65 = arith.constant 0 : index
    %c0_66 = arith.constant 0 : index
    %c0_67 = arith.constant 0 : index
    %133 = vector.load %arg7[%c0_65, %c0_66, %c0_67] : memref<1x1x32xf32, #tpu.memory_space<vmem>>, vector<1x1x32xf32>
    %134 = vector.shape_cast %133 : vector<1x1x32xf32> to vector<1x32xf32>
    %135 = vector.broadcast %134 : vector<1x32xf32> to vector<8x32xf32>
    %136 = arith.addf %132, %135 : vector<8x32xf32>
    %137 = arith.addf %4, %136 : vector<8x32xf32>
    %cst_68 = arith.constant dense<0.000000e+00> : vector<8xf32>
    %138 = vector.multi_reduction <add>, %137, %cst_68 [1] : vector<8x32xf32> to vector<8xf32>
    %139 = vector.shape_cast %138 : vector<8xf32> to vector<8x1xf32>
    %cst_69 = arith.constant 3.200000e+01 : f32
    %140 = vector.broadcast %cst_69 : f32 to vector<8x1xf32>
    %141 = arith.divf %139, %140 : vector<8x1xf32>
    %142 = vector.broadcast %141 : vector<8x1xf32> to vector<8x32xf32>
    %143 = arith.subf %137, %142 : vector<8x32xf32>
    %144 = arith.mulf %143, %143 : vector<8x32xf32>
    %cst_70 = arith.constant dense<0.000000e+00> : vector<8xf32>
    %145 = vector.multi_reduction <add>, %144, %cst_70 [1] : vector<8x32xf32> to vector<8xf32>
    %146 = vector.shape_cast %145 : vector<8xf32> to vector<8x1xf32>
    %cst_71 = arith.constant 3.200000e+01 : f32
    %147 = vector.broadcast %cst_71 : f32 to vector<8x1xf32>
    %148 = arith.divf %146, %147 : vector<8x1xf32>
    %149 = vector.broadcast %141 : vector<8x1xf32> to vector<8x32xf32>
    %150 = arith.subf %137, %149 : vector<8x32xf32>
    %cst_72 = arith.constant 9.99999974E-6 : f32
    %151 = vector.broadcast %cst_72 : f32 to vector<8x1xf32>
    %152 = arith.addf %148, %151 : vector<8x1xf32>
    %153 = math.rsqrt %152 : vector<8x1xf32>
    %154 = vector.broadcast %153 : vector<8x1xf32> to vector<8x32xf32>
    %155 = arith.mulf %150, %154 : vector<8x32xf32>
    %c0_73 = arith.constant 0 : index
    %c0_74 = arith.constant 0 : index
    %c0_75 = arith.constant 0 : index
    %156 = vector.load %arg8[%c0_73, %c0_74, %c0_75] : memref<1x1x32xf32, #tpu.memory_space<vmem>>, vector<1x1x32xf32>
    %157 = vector.shape_cast %156 : vector<1x1x32xf32> to vector<1x32xf32>
    %158 = vector.broadcast %157 : vector<1x32xf32> to vector<8x32xf32>
    %159 = arith.mulf %155, %158 : vector<8x32xf32>
    %c0_76 = arith.constant 0 : index
    %c0_77 = arith.constant 0 : index
    %c0_78 = arith.constant 0 : index
    %160 = vector.load %arg9[%c0_76, %c0_77, %c0_78] : memref<1x1x32xf32, #tpu.memory_space<vmem>>, vector<1x1x32xf32>
    %161 = vector.shape_cast %160 : vector<1x1x32xf32> to vector<1x32xf32>
    %162 = vector.broadcast %161 : vector<1x32xf32> to vector<8x32xf32>
    %163 = arith.addf %159, %162 : vector<8x32xf32>
    %164 = arith.truncf %163 : vector<8x32xf32> to vector<8x32xbf16>
    %c0_79 = arith.constant 0 : index
    %c0_80 = arith.constant 0 : index
    %c0_81 = arith.constant 0 : index
    %165 = vector.load %arg10[%c0_79, %c0_80, %c0_81] : memref<1x32x64xbf16, #tpu.memory_space<vmem>>, vector<1x32x64xbf16>
    %166 = vector.shape_cast %165 : vector<1x32x64xbf16> to vector<32x64xbf16>
    %cst_82 = arith.constant dense<0.000000e+00> : vector<8x64xf32>
    %167 = tpu.matmul %164, %166, %cst_82 {dimension_numbers = #tpu.dot_dimension_numbers<[1], [0], [0], [1], [0, 0, 1, 1], [], []>} : vector<8x32xbf16>, vector<32x64xbf16>, vector<8x64xf32> -> vector<8x64xf32>
    %c0_83 = arith.constant 0 : index
    %c0_84 = arith.constant 0 : index
    %c0_85 = arith.constant 0 : index
    %168 = vector.load %arg11[%c0_83, %c0_84, %c0_85] : memref<1x1x64xf32, #tpu.memory_space<vmem>>, vector<1x1x64xf32>
    %169 = vector.shape_cast %168 : vector<1x1x64xf32> to vector<1x64xf32>
    %170 = vector.broadcast %169 : vector<1x64xf32> to vector<8x64xf32>
    %171 = arith.addf %167, %170 : vector<8x64xf32>
    %cst_86 = arith.constant 0.000000e+00 : f32
    %172 = vector.broadcast %cst_86 : f32 to vector<8x64xf32>
    %173 = arith.maximumf %171, %172 : vector<8x64xf32>
    %174 = arith.truncf %173 : vector<8x64xf32> to vector<8x64xbf16>
    %c0_87 = arith.constant 0 : index
    %c0_88 = arith.constant 0 : index
    %c0_89 = arith.constant 0 : index
    %175 = vector.load %arg12[%c0_87, %c0_88, %c0_89] : memref<1x64x32xbf16, #tpu.memory_space<vmem>>, vector<1x64x32xbf16>
    %176 = vector.shape_cast %175 : vector<1x64x32xbf16> to vector<64x32xbf16>
    %cst_90 = arith.constant dense<0.000000e+00> : vector<8x32xf32>
    %177 = tpu.matmul %174, %176, %cst_90 {dimension_numbers = #tpu.dot_dimension_numbers<[1], [0], [0], [1], [0, 0, 1, 1], [], []>} : vector<8x64xbf16>, vector<64x32xbf16>, vector<8x32xf32> -> vector<8x32xf32>
    %c0_91 = arith.constant 0 : index
    %c0_92 = arith.constant 0 : index
    %c0_93 = arith.constant 0 : index
    %178 = vector.load %arg13[%c0_91, %c0_92, %c0_93] : memref<1x1x32xf32, #tpu.memory_space<vmem>>, vector<1x1x32xf32>
    %179 = vector.shape_cast %178 : vector<1x1x32xf32> to vector<1x32xf32>
    %180 = vector.broadcast %179 : vector<1x32xf32> to vector<8x32xf32>
    %181 = arith.addf %177, %180 : vector<8x32xf32>
    %182 = arith.addf %163, %181 : vector<8x32xf32>
    %cst_94 = arith.constant dense<0.000000e+00> : vector<8xf32>
    %183 = vector.multi_reduction <add>, %182, %cst_94 [1] : vector<8x32xf32> to vector<8xf32>
    %184 = vector.shape_cast %183 : vector<8xf32> to vector<8x1xf32>
    %cst_95 = arith.constant 3.200000e+01 : f32
    %185 = vector.broadcast %cst_95 : f32 to vector<8x1xf32>
    %186 = arith.divf %184, %185 : vector<8x1xf32>
    %187 = vector.broadcast %186 : vector<8x1xf32> to vector<8x32xf32>
    %188 = arith.subf %182, %187 : vector<8x32xf32>
    %189 = arith.mulf %188, %188 : vector<8x32xf32>
    %cst_96 = arith.constant dense<0.000000e+00> : vector<8xf32>
    %190 = vector.multi_reduction <add>, %189, %cst_96 [1] : vector<8x32xf32> to vector<8xf32>
    %191 = vector.shape_cast %190 : vector<8xf32> to vector<8x1xf32>
    %cst_97 = arith.constant 3.200000e+01 : f32
    %192 = vector.broadcast %cst_97 : f32 to vector<8x1xf32>
    %193 = arith.divf %191, %192 : vector<8x1xf32>
    %194 = vector.broadcast %186 : vector<8x1xf32> to vector<8x32xf32>
    %195 = arith.subf %182, %194 : vector<8x32xf32>
    %cst_98 = arith.constant 9.99999974E-6 : f32
    %196 = vector.broadcast %cst_98 : f32 to vector<8x1xf32>
    %197 = arith.addf %193, %196 : vector<8x1xf32>
    %198 = math.rsqrt %197 : vector<8x1xf32>
    %199 = vector.broadcast %198 : vector<8x1xf32> to vector<8x32xf32>
    %200 = arith.mulf %195, %199 : vector<8x32xf32>
    %c0_99 = arith.constant 0 : index
    %c0_100 = arith.constant 0 : index
    %c0_101 = arith.constant 0 : index
    %201 = vector.load %arg14[%c0_99, %c0_100, %c0_101] : memref<1x1x32xf32, #tpu.memory_space<vmem>>, vector<1x1x32xf32>
    %202 = vector.shape_cast %201 : vector<1x1x32xf32> to vector<1x32xf32>
    %203 = vector.broadcast %202 : vector<1x32xf32> to vector<8x32xf32>
    %204 = arith.mulf %200, %203 : vector<8x32xf32>
    %c0_102 = arith.constant 0 : index
    %c0_103 = arith.constant 0 : index
    %c0_104 = arith.constant 0 : index
    %205 = vector.load %arg15[%c0_102, %c0_103, %c0_104] : memref<1x1x32xf32, #tpu.memory_space<vmem>>, vector<1x1x32xf32>
    %206 = vector.shape_cast %205 : vector<1x1x32xf32> to vector<1x32xf32>
    %207 = vector.broadcast %206 : vector<1x32xf32> to vector<8x32xf32>
    %208 = arith.addf %204, %207 : vector<8x32xf32>
    %209 = vector.shape_cast %208 : vector<8x32xf32> to vector<1x8x32xf32>
    %c0_105 = arith.constant 0 : index
    %c0_106 = arith.constant 0 : index
    %c0_107 = arith.constant 0 : index
    %210 = vector.load %arg16[%c0_105, %c0_106, %c0_107] : memref<1x8x32xf32, #tpu.memory_space<vmem>>, vector<1x8x32xf32>
    tpu.vector_store %arg16[%c0_105, %c0_106, %c0_107], %209 {strides = array<i32>} : memref<1x8x32xf32, #tpu.memory_space<vmem>>, vector<1x8x32xf32>,
    return
  }
  func.func @transform_0(%arg0: i32, %arg1: i32) -> (i32, i32, i32) {
    %c0_i32 = arith.constant 0 : i32
    %c0_i32_0 = arith.constant 0 : i32
    %c0_i32_1 = arith.constant 0 : i32
    return %arg0, %c0_i32, %c0_i32_0 : i32, i32, i32
  }
  func.func @transform_1(%arg0: i32, %arg1: i32) -> (i32, i32, i32) {
    %c0_i32 = arith.constant 0 : i32
    %c0_i32_0 = arith.constant 0 : i32
    %c0_i32_1 = arith.constant 0 : i32
    return %arg0, %c0_i32, %c0_i32_0 : i32, i32, i32
  }
  func.func @transform_2(%arg0: i32, %arg1: i32) -> (i32, i32, i32) {
    %c0_i32 = arith.constant 0 : i32
    %c0_i32_0 = arith.constant 0 : i32
    %c0_i32_1 = arith.constant 0 : i32
    return %arg1, %c0_i32, %c0_i32_0 : i32, i32, i32
  }
  func.func @transform_3(%arg0: i32, %arg1: i32) -> (i32, i32, i32) {
    %c0_i32 = arith.constant 0 : i32
    %c0_i32_0 = arith.constant 0 : i32
    %c0_i32_1 = arith.constant 0 : i32
    return %arg1, %c0_i32, %c0_i32_0 : i32, i32, i32
  }
  func.func @transform_4(%arg0: i32, %arg1: i32) -> (i32, i32, i32) {
    %c0_i32 = arith.constant 0 : i32
    %c0_i32_0 = arith.constant 0 : i32
    %c0_i32_1 = arith.constant 0 : i32
    return %arg1, %c0_i32, %c0_i32_0 : i32, i32, i32
  }
  func.func @transform_5(%arg0: i32, %arg1: i32) -> (i32, i32, i32) {
    %c0_i32 = arith.constant 0 : i32
    %c0_i32_0 = arith.constant 0 : i32
    %c0_i32_1 = arith.constant 0 : i32
    return %arg1, %c0_i32, %c0_i32_0 : i32, i32, i32
  }
  func.func @transform_6(%arg0: i32, %arg1: i32) -> (i32, i32, i32) {
    %c0_i32 = arith.constant 0 : i32
    %c0_i32_0 = arith.constant 0 : i32
    %c0_i32_1 = arith.constant 0 : i32
    return %arg1, %c0_i32, %c0_i32_0 : i32, i32, i32
  }
  func.func @transform_7(%arg0: i32, %arg1: i32) -> (i32, i32, i32) {
    %c0_i32 = arith.constant 0 : i32
    %c0_i32_0 = arith.constant 0 : i32
    %c0_i32_1 = arith.constant 0 : i32
    return %arg1, %c0_i32, %c0_i32_0 : i32, i32, i32
  }
  func.func @transform_8(%arg0: i32, %arg1: i32) -> (i32, i32, i32) {
    %c0_i32 = arith.constant 0 : i32
    %c0_i32_0 = arith.constant 0 : i32
    %c0_i32_1 = arith.constant 0 : i32
    return %arg1, %c0_i32, %c0_i32_0 : i32, i32, i32
  }
  func.func @transform_9(%arg0: i32, %arg1: i32) -> (i32, i32, i32) {
    %c0_i32 = arith.constant 0 : i32
    %c0_i32_0 = arith.constant 0 : i32
    %c0_i32_1 = arith.constant 0 : i32
    return %arg1, %c0_i32, %c0_i32_0 : i32, i32, i32
  }
  func.func @transform_10(%arg0: i32, %arg1: i32) -> (i32, i32, i32) {
    %c0_i32 = arith.constant 0 : i32
    %c0_i32_0 = arith.constant 0 : i32
    %c0_i32_1 = arith.constant 0 : i32
    return %arg1, %c0_i32, %c0_i32_0 : i32, i32, i32
  }
  func.func @transform_11(%arg0: i32, %arg1: i32) -> (i32, i32, i32) {
    %c0_i32 = arith.constant 0 : i32
    %c0_i32_0 = arith.constant 0 : i32
    %c0_i32_1 = arith.constant 0 : i32
    return %arg1, %c0_i32, %c0_i32_0 : i32, i32, i32
  }
  func.func @transform_12(%arg0: i32, %arg1: i32) -> (i32, i32, i32) {
    %c0_i32 = arith.constant 0 : i32
    %c0_i32_0 = arith.constant 0 : i32
    %c0_i32_1 = arith.constant 0 : i32
    return %arg1, %c0_i32, %c0_i32_0 : i32, i32, i32
  }
  func.func @transform_13(%arg0: i32, %arg1: i32) -> (i32, i32, i32) {
    %c0_i32 = arith.constant 0 : i32
    %c0_i32_0 = arith.constant 0 : i32
    %c0_i32_1 = arith.constant 0 : i32
    return %arg1, %c0_i32, %c0_i32_0 : i32, i32, i32
  }
  func.func @transform_14(%arg0: i32, %arg1: i32) -> (i32, i32, i32) {
    %c0_i32 = arith.constant 0 : i32
    %c0_i32_0 = arith.constant 0 : i32
    %c0_i32_1 = arith.constant 0 : i32
    return %arg0, %c0_i32, %c0_i32_0 : i32, i32, i32
  }
  func.func @transform_15(%arg0: i32, %arg1: i32) -> (i32, i32, i32, i32, i32) {
    %c0_i32 = arith.constant 0 : i32
    %c0_i32_0 = arith.constant 0 : i32
    %c0_i32_1 = arith.constant 0 : i32
    %c0_i32_2 = arith.constant 0 : i32
    return %arg1, %arg0, %c0_i32, %c0_i32_0, %c0_i32_1 : i32, i32, i32, i32, i32
  }
}

</mosaic_0001>

<bundles_post_ra>
// kernel: tpu_custom_call.1
= control target key start
LH: loop header
LB: loop body
LE: loop exit
PB: predicated region body
PF: predicated region fallthrough
CT: control target
= control target key end

     0   :  { %s3529_s0 = inlined_call_operand.hbm [shape: f32[2,8,32], index: 0, kind: input, shape index: {}]   ;;  %s3530_s1 = inlined_call_operand.vmem [shape: f32[2,1,8], index: 1, kind: input, shape index: {}]   ;;  %s3531_s2 = inlined_call_operand.vmem [shape: bf16[2,32,96], index: 2, kind: input, shape index: {}]   ;;  %s3532_s3 = inlined_call_operand.vmem [shape: f32[2,1,96], index: 3, kind: input, shape index: {}]   ;;  %s3533_s4 = inlined_call_operand.vmem [shape: bf16[2,32,32], index: 4, kind: input, shape index: {}]   ;;  %s3534_s5 = inlined_call_operand.hbm [shape: f32[2,1,32], index: 5, kind: input, shape index: {}]   ;;  %s3535_s6 = inlined_call_operand.hbm [shape: f32[2,1,32], index: 6, kind: input, shape index: {}]   ;;  %s3536_s7 = inlined_call_operand.hbm [shape: f32[2,1,32], index: 7, kind: input, shape index: {}]   ;;  %s3537_s8 = inlined_call_operand.vmem [shape: bf16[2,32,64], index: 8, kind: input, shape index: {}]   ;;  %s3538_s9 = inlined_call_operand.hbm [shape: f32[2,1,64], index: 9, kind: input, shape index: {}]   ;;  %s3539_s10 = inlined_call_operand.vmem [shape: bf16[2,64,32], index: 10, kind: input, shape index: {}]   ;;  %s3540_s11 = inlined_call_operand.vmem [shape: f32[2,1,32], index: 11, kind: input, shape index: {}]   ;;  %s3541_s12 = inlined_call_operand.vmem [shape: f32[2,1,32], index: 12, kind: input, shape index: {}]   ;;  %s3542_s13 = inlined_call_operand.vmem [shape: f32[2,1,32], index: 13, kind: input, shape index: {}]   ;;  %s3543_s14 = inlined_call_operand.hbm [shape: f32[2,8,32], index: 14, kind: output, shape index: {0}]   ;;  %s3544_s15 = inlined_call_operand.hbm [shape: bf16[2,2,4,8,8], index: 15, kind: output, shape index: {1}]  }
   0x1   :  { %3586 = sst [smem:[#allocation44_spill]] %s3529_s0 }
   0x2   :  { %3587 = sst [smem:[#allocation45_spill]] %s3530_s1 }
   0x3   :  { %3588 = sst [smem:[#allocation46_spill]] %s3531_s2 }
   0x4   :  { %3589 = sst [smem:[#allocation47_spill]] %s3532_s3 }
   0x5   :  { %3590 = sst [smem:[#allocation48_spill]] %s3533_s4 }
   0x6   :  { %3591 = sst [smem:[#allocation49_spill]] %s3534_s5 }
   0x7   :  { %3592 = sst [smem:[#allocation50_spill]] %s3535_s6 }
   0x8   :  { %3593 = sst [smem:[#allocation51_spill]] %s3536_s7 }
   0x9   :  { %3594 = sst [smem:[#allocation52_spill]] %s3537_s8 }
   0xa   :  { %3595 = sst [smem:[#allocation53_spill]] %s3538_s9 }
   0xb   :  { %3596 = sst [smem:[#allocation54_spill]] %s3539_s10 }
   0xc   :  { %3597 = sst [smem:[#allocation55_spill]] %s3540_s11 }
   0xd   :  { %3598 = sst [smem:[#allocation56_spill]] %s3541_s12 }
   0xe   :  { %3599 = sst [smem:[#allocation57_spill]] %s3542_s13 }
   0xf   :  { %3600 = sst [smem:[#allocation58_spill]] %s3543_s14 }
  0x10   :  { %3601 = sst [smem:[#allocation59_spill]] %s3544_s15 }
  0x11   :  { %21 = vsyncpa [#allocation4], 0 }
  0x12   :  { %23 = vsyncpa [#allocation4 + $0x1], 0 }
  0x13   :  { %24 = vsyncpa [#allocation7], 0 }
  0x14   :  { %26 = vsyncpa [#allocation7 + $0x1], 0 }
  0x15   :  { %27 = vsyncpa [#allocation10], 0 }
  0x16   :  { %29 = vsyncpa [#allocation10 + $0x1], 0 }
  0x17   :  { %30 = vsyncpa [#allocation5], 0 }
  0x18   :  { %32 = vsyncpa [#allocation5 + $0x1], 0 }
  0x19   :  { %33 = vsyncpa [#allocation14], 0 }
  0x1a   :  { %35 = vsyncpa [#allocation14 + $0x1], 0  ;;  %s2812_s18 = smov 0   ;;  %s2814_s19 = smov 0  }
  0x1b   :  { %s2816_s20 = smov 0   ;;  %s2818_s21 = smov 0  }
  0x1c   :  { %s2820_s22 = smov 0   ;;  %s2822_s23 = smov 0  }
  0x1d   :  { %s2824_s24 = smov 0   ;;  %s2826_s25 = smov 0  }
  0x1e   :  { %s2828_s26 = smov 0   ;;  %s2830_s27 = smov 0  }
  0x1f   :  { %s2832_s28 = smov 0   ;;  %s2834_s29 = smov 0  }
  0x20   :  { %s2836_s30 = smov 0   ;;  %s2838_s16 = smov 0  }
  0x21 LB: > { %3602 = sst [smem:[#allocation20_spill]] %s2654_s18  ;;  %s50_s17 = sadd.s32 1, %s2698_s29  ;;  %s2706_s16 = sphi %s2838_s16, %s41_s16   ;;  %s2702_s30 = sphi %s2836_s30, %s3711_s30   ;;  %s2698_s29 = sphi %s2834_s29, %s3710_s29   ;;  %s2694_s28 = sphi %s2832_s28, %s3709_s28   ;;  %s2690_s27 = sphi %s2830_s27, %s3708_s27   ;;  %s2686_s26 = sphi %s2828_s26, %s3707_s26   ;;  %s2682_s25 = sphi %s2826_s25, %s3706_s25   ;;  %s2678_s24 = sphi %s2824_s24, %s3705_s24   ;;  %s2674_s23 = sphi %s2822_s23, %s3704_s23   ;;  %s2670_s22 = sphi %s2820_s22, %s3713_s22   ;;  %s2666_s21 = sphi %s2818_s21, %s3702_s21   ;;  %s2662_s20 = sphi %s2816_s20, %s3701_s20   ;;  %s2658_s19 = sphi %s2814_s19, %s3700_s19   ;;  %s2654_s18 = sphi %s2812_s18, %s3699_s18  }
  0x22   : > { %3603 = sst [smem:[#allocation21_spill]] %s2658_s19  ;;  %p3554_p0 = scmp.eq.s32.totalorder %s2706_s16, 0 }
  0x23   : > { %3604 = sst [smem:[#allocation22_spill]] %s2662_s20  ;;  %p2884_p1 = scmp.ge.s32.totalorder %s50_s17, 2 }
  0x24   : > { %3605 = sst [smem:[#allocation23_spill]] %s2670_s22  ;;  %s190_s15 = sadd.s32 1, %s2674_s23 }
  0x25   : > { %3606 = sst [smem:[#allocation24_spill]] %s2674_s23  ;;  %p197_p2 = scmp.ne.s32.totalorder %s2674_s23, %s2670_s22 }
  0x26   : > { %3607 = sst [smem:[#allocation25_spill]] %s2678_s24  ;;  %s3715_s17 = smov (%p2884_p1, %s50_s17), 0 }
  0x27   : > { %3608 = sst [smem:[#allocation26_spill]] %s2682_s25  ;;  %p199_p4 = por %p197_p2, %p3554_p0 }
  0x28   : > { %3609 = sst [smem:[#allocation27_spill]] %s2686_s26  ;;  %s2901_s13 = ssub.s32 %s2698_s29, %s3715_s17 }
  0x29   : > { %3610 = sst [smem:[#allocation28_spill]] %s2690_s27  ;;  %p3553_p5 = scmp.lt.s32.totalorder %s2706_s16, 4 }
  0x2a   : > { %3611 = sst [smem:[#allocation29_spill]] %s2694_s28  ;;  %p188_p6 = scmp.eq.s32.totalorder %s2901_s13, 0 }
  0x2b   : > { %3612 = sst [smem:[#allocation30_spill]] %s2698_s29  ;;  %s3555_s12 = sand.u32 1, %s2706_s16  }
  0x2c   : > { %3613 = sst [smem:[#allocation31_spill]] %s2702_s30  ;;  %s2907_s11 = sand.u32 1, %s2674_s23  }
  0x2d   : > { %3614 = sst [smem:[#allocation32_spill]] %s2706_s16  ;;  %s2913_s8 = sshll.u32 %s2698_s29, 4 }
  0x2e   : > { %s3615_s14 = scalar_select %p2884_p1, 1, 0 }
  0x2f   : > { %3616 = sst [smem:[#allocation33_spill]] %s3715_s17  ;;  %s3618_s5 = sld [smem:[#allocation49_spill]] }
  0x30   : > { %s2910_s10 = scalar_select %p188_p6, %s2674_s23, %s190_s15  }
  0x31   : > { %s538_s17 = scalar_lea.vmem [#allocation6], %s2907_s11  ;;  %p2926_p7 = pnand %p3553_p5, %p199_p4 }
  0x32   : > { %3617 = sst [smem:[#allocation34_spill]] %s2910_s10  ;;  %s545_s1 = sshll.u32 %s538_s17, 4  ;;  %s2922_s1 = int_to_ptr.vmem [resolvable:$true] %s545_s1 }
  0x33   : > { %s3619_s15 = scalar_select %p2926_p7, 1, 0 }
  0x34   : > { %s2934_s2 = scalar_lea.sflag [#allocation7], %s3555_s12  ;;  %p2940_p11 = pneg %p2926_p7 }
  0x35   : > { %s2919_s3 = scalar_lea.hbm %s3618_s5, %s2913_s8  ;;  %3620 = sst [smem:[#allocation35_spill]] %s2934_s2 }
  0x36   : > { %s2370_s4 = scalar_lea.hbm %s2919_s3, 16  ;;  %s2375_s23 = scalar_lea.hbm %s3618_s5, 32 }
  0x37   : > { %p2371_p10 = scmp.ne.s32.totalorder %s2919_s3, %s2370_s4  ;;  %p2376_p2 = scmp.lt.u32.totalorder %s2919_s3, %s3618_s5 }
  0x38   : > { %p2377_p4 = scmp.lt.u32.totalorder %s2375_s23, %s2370_s4  ;;  %p2379_p5 = scmp.lt.u32.totalorder %s2370_s4, %s2919_s3 }
  0x39   : > { %p2373_p12 = pnand %p2940_p11, %p2371_p10 }
  0x3a   : > { %p2378_p6 = por %p2377_p4, %p2376_p2 }
  0x3b   : > { %p2374_p13 = pneg %p2373_p12 }
  0x3c   : > { %p2380_p3 = por %p2379_p5, %p2378_p6 }
  0x3e   : > { %p2381_p0 = pnand %p2380_p3, %p2374_p13 }
  0x40   : > { %2384 = shalt.err (!%p2381_p0)
}
  0x41   : > { %s2385_s12 = scalar_lea.vmem %s2922_s1, 16  ;;  %s2708_s10 = smov [#allocation6]  }
  0x42   : > { %p2386_p10 = scmp.ne.s32.totalorder %s2922_s1, %s2385_s12  ;;  %s2390_s17 = sshll.u32 %s2708_s10, 4  ;;  %s2391_s17 = int_to_ptr.vmem [resolvable:$false] %s2390_s17 }
  0x43   : > { %s2392_s27 = scalar_lea.vmem %s2391_s17, 32  ;;  %p2393_p9 = scmp.lt.s32.totalorder %s2922_s1, %s2391_s17 }
  0x44   : > { %p2388_p12 = pnand %p2386_p10, %p2940_p11  ;;  %p2394_p1 = scmp.lt.s32.totalorder %s2392_s27, %s2385_s12 }
  0x46   : > { %p2389_p8 = pneg %p2388_p12  ;;  %p2395_p2 = por %p2394_p1, %p2393_p9 }
  0x48   : > { %p2396_p4 = pnand %p2395_p2, %p2389_p8 }
  0x4a   : > { %2399 = shalt.err (!%p2396_p4)
}
  0x4b   : > { %2192 = dma.hbm_to_vmem [thread:$0]  (!%p2926_p7), %s2919_s3, 16, %s2922_s1, %s2934_s2  }
  0x4c   : > { %p3622_p0 = scmp.lt.s32.totalorder %s2706_s16, 5  ;;  %p3623_p3 = scmp.ge.s32.totalorder %s2706_s16, 1 }
  0x4d   : > { %s3626_s7 = sld [smem:[#allocation51_spill]]  ;;  %s572_s10 = scalar_lea.vmem [#allocation9], %s2907_s11 }
  0x4e   : > { %p2968_p5 = pnand %p3623_p3, %p3622_p0  ;;  %s579_s17 = sshll.u32 %s572_s10, 4  ;;  %s580_s17 = int_to_ptr.vmem [resolvable:$true] %s579_s17 }
  0x4f   : > { %s3627_s27 = sand.u32 1, %s2706_s16  }
  0x50   : > { %s3624_s23 = scalar_select %p2968_p5, 1, 0 }
  0x51   : > { %s2981_s1 = scalar_lea.sflag [#allocation10], %s3627_s27 }
  0x52   : > { %3625 = sst [smem:[#allocation36_spill]] %s3624_s23 }
  0x53   : > { %s2976_s4 = scalar_lea.hbm %s3626_s7, %s2913_s8  ;;  %s2405_s12 = scalar_lea.hbm %s3626_s7, 32 }
  0x54   : > { %s2400_s3 = scalar_lea.hbm %s2976_s4, 16  ;;  %p2406_p13 = scmp.lt.u32.totalorder %s2976_s4, %s3626_s7 }
  0x55   : > { %p2401_p1 = scmp.ne.s32.totalorder %s2976_s4, %s2400_s3  ;;  %p2407_p6 = scmp.lt.u32.totalorder %s2405_s12, %s2400_s3 }
  0x56   : > { %p2409_p12 = scmp.lt.u32.totalorder %s2400_s3, %s2976_s4 }
  0x57   : > { %p2403_p8 = pnand %p2401_p1, %p2940_p11  ;;  %p2408_p10 = por %p2407_p6, %p2406_p13 }
  0x59   : > { %p2404_p9 = pneg %p2403_p8  ;;  %p2410_p2 = por %p2409_p12, %p2408_p10 }
  0x5b   : > { %p2411_p4 = pnand %p2410_p2, %p2404_p9 }
  0x5d   : > { %2414 = shalt.err (!%p2411_p4)
}
  0x5e   : > { %s2415_s10 = scalar_lea.vmem %s580_s17, 16  ;;  %s2709_s27 = smov [#allocation9]  }
  0x5f   : > { %p2416_p0 = scmp.ne.s32.totalorder %s580_s17, %s2415_s10  ;;  %s2420_s2 = sshll.u32 %s2709_s27, 4  ;;  %s2421_s2 = int_to_ptr.vmem [resolvable:$false] %s2420_s2 }
  0x60   : > { %s2422_s5 = scalar_lea.vmem %s2421_s2, 32  ;;  %p2423_p8 = scmp.lt.s32.totalorder %s580_s17, %s2421_s2 }
  0x61   : > { %p2418_p3 = pnand %p2416_p0, %p2940_p11  ;;  %p2424_p5 = scmp.lt.s32.totalorder %s2422_s5, %s2415_s10 }
  0x63   : > { %p2419_p1 = pneg %p2418_p3  ;;  %p2425_p7 = por %p2424_p5, %p2423_p8 }
  0x65   : > { %p2426_p6 = pnand %p2425_p7, %p2419_p1 }
  0x67   : > { %2429 = shalt.err (!%p2426_p6)
}
  0x68   : > { %p3628_p13 = scmp.ne.s32.totalorder %s3619_s15, 0  ;;  %s3002_s9 = sadd.s32 4294967295, %s2706_s16  }
  0x69   : > { %s1985_s2 = sadd.s32 4294967294, %s2706_s16   ;;  %s53_s23 = sadd.s32 1, %s2702_s30 }
  0x6a   : > { %2198 = dma.hbm_to_vmem [thread:$0]  (!%p3628_p13), %s2976_s4, 16, %s580_s17, %s2981_s1  }
  0x6b   : > { %p3629_p7 = scmp.ne.s32.totalorder %s3615_s14, 0  ;;  %s60_s3 = sadd.s32 1, %s2686_s26 }
  0x6c   : > { %p67_p5 = scmp.ne.s32.totalorder %s2686_s26, %s2682_s25  ;;  %p73_p10 = scmp.ne.s32.totalorder %s2682_s25, %s2678_s24 }
  0x6d   : > { %s3717_s23 = smov (!%p3629_p7, %s53_s23), %s2702_s30  ;;  %p3630_p12 = scmp.eq.s32.totalorder %s2706_s16, 0 }
  0x6e   : > { %p55_p9 = scmp.ge.s32.totalorder %s3717_s23, 2  ;;  %p74_p4 = scmp.eq.s32.totalorder %s3002_s9, 0 }
  0x6f   : > { %p3016_p2 = por %p3630_p12, %p67_p5  ;;  %p3634_p3 = scmp.ne.s32.totalorder %s2670_s22, %s2666_s21 }
  0x70   : > { %s3719_s23 = smov (%p55_p9, %s3717_s23), 0  ;;  %p3026_p0 = por %p74_p4, %p73_p10 }
  0x71   : > { %3632 = sst [smem:[#allocation37_spill]] %s3719_s23  ;;  %p3033_p1 = por %p3634_p3, %p74_p4 }
  0x72   : > { %s3633_s14 = scalar_select %p3026_p0, 1, 0 }
  0x73   : > { %s3635_s17 = scalar_select %p3033_p1, 1, 0 }
  0x74   : > { %s57_s12 = ssub.s32 %s2702_s30, %s3719_s23  ;;  %p435_p8 = scmp.eq.s32.totalorder %s3002_s9, 3 }
  0x75   : > { %p58_p6 = scmp.eq.s32.totalorder %s57_s12, 0  ;;  %p3040_p7 = scmp.eq.s32.totalorder %s1985_s2, 3 }
  0x76   : > { %p3044_p9 = por %p435_p8, %p67_p5  ;;  %s449_s21 = sor.u32 %s2901_s13, %s57_s12 }
  0x77   : > { %s3050_s27 = scalar_select %p58_p6, %s2686_s26, %s60_s3  }
  0x78   : > { %s3637_s10 = scalar_select %p3044_p9, 1, 0 }
  0x79   : > { %3639 = sst [smem:[#allocation39_spill]] %s3050_s27  ;;  %p3057_p12 = por %p3040_p7, %p73_p10 }
  0x7a   : > { %3638 = sst [smem:[#allocation38_spill]] %s3637_s10  ;;  %p450_p4 = scmp.eq.s32.totalorder %s449_s21, 0 }
  0x7b   : > { %s3640_s5 = scalar_select %p3057_p12, 1, 0 }
  0x7c   : > { %s452_s2 = sadd.s32 1, %s2662_s20  ;;  %p462_p3 = scmp.ne.s32.totalorder %s2662_s20, %s2658_s19 }
  0x7d   : > { %3641 = sst [smem:[#allocation40_spill]] %s3640_s5  ;;  %p468_p5 = scmp.ne.s32.totalorder %s2658_s19, %s2654_s18 }
  0x7e   : > { %s3065_s7 = scalar_select %p450_p4, %s2662_s20, %s452_s2  }
  0x7f   : > { %p3067_p1 = por %p462_p3, %p435_p8  ;;  %s489_s10 = sand.u32 1, %s2686_s26  }
  0x80   : > { %3642 = sst [smem:[#allocation41_spill]] %s3065_s7  ;;  %s1989_s13 = sshll.u32 %s2702_s30, 7 }
  0x81   : > { %s3643_s23 = scalar_select %p3067_p1, 1, 0 }
  0x82   : > { %p3077_p6 = por %p468_p5, %p3040_p7  ;;  %s1988_s12 = sshll.u32 %s489_s10, 3 }
  0x83   : > { %3644 = sst [smem:[#allocation42_spill]] %s3643_s23  ;;  %s3647_s0 = sld [smem:[#allocation44_spill]] }
  0x84   : > { %s3645_s3 = scalar_select %p3077_p6, 1, 0 }
  0x85   : > { %p3648_p10 = scmp.lt.s32.totalorder %s2706_s16, 4  ;;  %s493_s28 = scalar_lea.vmem [#allocation3], %s1988_s12 }
  0x86   : > { %3646 = sst [smem:[#allocation43_spill]] %s3645_s3  ;;  %s500_s30 = sshll.u32 %s493_s28, 4  ;;  %s3094_s30 = int_to_ptr.vmem [resolvable:$true] %s500_s30 }
  0x87   : > { %p3090_p8 = pnand %p3648_p10, %p3016_p2  ;;  %s490_s26 = scalar_lea.sflag [#allocation4], %s489_s10 }
  0x89   : > { %s3084_s21 = scalar_lea.hbm %s3647_s0, %s1989_s13  ;;  %p2432_p4 = pneg %p3090_p8 }
  0x8a   : > { %s2430_s27 = scalar_lea.hbm %s3084_s21, 128  ;;  %s2435_s13 = scalar_lea.hbm %s3647_s0, 256 }
  0x8b   : > { %p2431_p7 = scmp.ne.s32.totalorder %s3084_s21, %s2430_s27  ;;  %p2436_p2 = scmp.lt.u32.totalorder %s3084_s21, %s3647_s0 }
  0x8c   : > { %p2437_p10 = scmp.lt.u32.totalorder %s2435_s13, %s2430_s27  ;;  %p2439_p12 = scmp.lt.u32.totalorder %s2430_s27, %s3084_s21 }
  0x8d   : > { %p2433_p3 = pnand %p2432_p4, %p2431_p7 }
  0x8e   : > { %p2438_p6 = por %p2437_p10, %p2436_p2 }
  0x8f   : > { %p2434_p5 = pneg %p2433_p3 }
  0x90   : > { %p2440_p9 = por %p2439_p12, %p2438_p6 }
  0x92   : > { %p2441_p1 = pnand %p2440_p9, %p2434_p5 }
  0x94   : > { %2444 = shalt.err (!%p2441_p1)
}
  0x95   : > { %s2445_s10 = scalar_lea.vmem %s3094_s30, 128  ;;  %s2710_s12 = smov [#allocation3]  }
  0x96   : > { %p2446_p7 = scmp.ne.s32.totalorder %s3094_s30, %s2445_s10  ;;  %s2450_s28 = sshll.u32 %s2710_s12, 4  ;;  %s2451_s28 = int_to_ptr.vmem [resolvable:$false] %s2450_s28 }
  0x97   : > { %s2452_s7 = scalar_lea.vmem %s2451_s28, 256  ;;  %p2453_p13 = scmp.lt.s32.totalorder %s3094_s30, %s2451_s28 }
  0x98   : > { %p2448_p3 = pnand %p2446_p7, %p2432_p4  ;;  %p2454_p2 = scmp.lt.s32.totalorder %s2452_s7, %s2445_s10 }
  0x9a   : > { %p2449_p0 = pneg %p2448_p3  ;;  %p2455_p10 = por %p2454_p2, %p2453_p13 }
  0x9c   : > { %p2456_p12 = pnand %p2455_p10, %p2449_p0 }
  0x9e   : > { %2459 = shalt.err (!%p2456_p12)
}
  0x9f   : > { %2189 = dma.hbm_to_vmem [thread:$0]  (!%p3090_p8), %s3084_s21, 128, %s3094_s30, %s490_s26  }
  0xa0   : > { %s3650_s6 = sld [smem:[#allocation50_spill]]  ;;  %s555_s5 = scalar_lea.vmem [#allocation8], %s2907_s11 }
  0xa1   : > { %s562_s13 = sshll.u32 %s555_s5, 4  ;;  %s563_s13 = int_to_ptr.vmem [resolvable:$true] %s562_s13 }
  0xa6   : > { %s3125_s4 = scalar_lea.hbm %s3650_s6, %s2913_s8  ;;  %s2465_s26 = scalar_lea.hbm %s3650_s6, 32 }
  0xa7   : > { %s2460_s10 = scalar_lea.hbm %s3125_s4, 16  ;;  %p2466_p9 = scmp.lt.u32.totalorder %s3125_s4, %s3650_s6 }
  0xa8   : > { %p2461_p13 = scmp.ne.s32.totalorder %s3125_s4, %s2460_s10  ;;  %p2467_p6 = scmp.lt.u32.totalorder %s2465_s26, %s2460_s10 }
  0xa9   : > { %p2469_p4 = scmp.lt.u32.totalorder %s2460_s10, %s3125_s4 }
  0xaa   : > { %p2463_p0 = pnand %p2461_p13, %p2940_p11  ;;  %p2468_p8 = por %p2467_p6, %p2466_p9 }
  0xac   : > { %p2464_p1 = pneg %p2463_p0  ;;  %p2470_p5 = por %p2469_p4, %p2468_p8 }
  0xae   : > { %p2471_p7 = pnand %p2470_p5, %p2464_p1 }
  0xb0   : > { %2474 = shalt.err (!%p2471_p7)
}
  0xb1   : > { %s2475_s28 = scalar_lea.vmem %s563_s13, 16  ;;  %s2711_s7 = smov [#allocation8]  }
  0xb2   : > { %p2476_p3 = scmp.ne.s32.totalorder %s563_s13, %s2475_s28  ;;  %s2480_s20 = sshll.u32 %s2711_s7, 4  ;;  %s2481_s20 = int_to_ptr.vmem [resolvable:$false] %s2480_s20 }
  0xb3   : > { %s2482_s27 = scalar_lea.vmem %s2481_s20, 32  ;;  %p2483_p12 = scmp.lt.s32.totalorder %s563_s13, %s2481_s20 }
  0xb4   : > { %p2478_p2 = pnand %p2476_p3, %p2940_p11  ;;  %p2484_p13 = scmp.lt.s32.totalorder %s2482_s27, %s2475_s28 }
  0xb6   : > { %p2479_p10 = pneg %p2478_p2  ;;  %p2485_p0 = por %p2484_p13, %p2483_p12 }
  0xb8   : > { %p2486_p6 = pnand %p2485_p0, %p2479_p10 }
  0xba   : > { %2489 = shalt.err (!%p2486_p6)
}
  0xbb   : > { %p3651_p9 = scmp.ne.s32.totalorder %s3619_s15, 0  ;;  %s3652_s5 = sld [smem:[#allocation35_spill]] }
  0xbc   : > { %s3653_s12 = sld [smem:[#allocation53_spill]]  ;;  %s597_s30 = scalar_lea.vmem [#allocation11], %s2907_s11 }
  0xbd   : > { %s604_s21 = sshll.u32 %s597_s30, 4  ;;  %s605_s21 = int_to_ptr.vmem [resolvable:$true] %s604_s21 }
  0xc1   : > { %2195 = dma.hbm_to_vmem [thread:$0]  (!%p3651_p9), %s3125_s4, 16, %s563_s13, %s3652_s5  }
  0xc2   : > { %s3150_s26 = scalar_lea.hbm %s3653_s12, %s2913_s8  ;;  %s2495_s4 = scalar_lea.hbm %s3653_s12, 32 }
  0xc3   : > { %s2490_s28 = scalar_lea.hbm %s3150_s26, 16  ;;  %p2496_p5 = scmp.lt.u32.totalorder %s3150_s26, %s3653_s12 }
  0xc4   : > { %p2491_p1 = scmp.ne.s32.totalorder %s3150_s26, %s2490_s28  ;;  %p2497_p7 = scmp.lt.u32.totalorder %s2495_s4, %s2490_s28 }
  0xc5   : > { %p2499_p2 = scmp.lt.u32.totalorder %s2490_s28, %s3150_s26 }
  0xc6   : > { %p2493_p8 = pnand %p2491_p1, %p2940_p11  ;;  %p2498_p3 = por %p2497_p7, %p2496_p5 }
  0xc8   : > { %p2494_p4 = pneg %p2493_p8  ;;  %p2500_p10 = por %p2499_p2, %p2498_p3 }
  0xca   : > { %p2501_p12 = pnand %p2500_p10, %p2494_p4 }
  0xcc   : > { %2504 = shalt.err (!%p2501_p12)
}
  0xcd   : > { %s2505_s8 = scalar_lea.vmem %s605_s21, 16  ;;  %s2712_s11 = smov [#allocation11]  }
  0xce   : > { %p2506_p13 = scmp.ne.s32.totalorder %s605_s21, %s2505_s8  ;;  %s2510_s5 = sshll.u32 %s2712_s11, 4  ;;  %s2511_s5 = int_to_ptr.vmem [resolvable:$false] %s2510_s5 }
  0xcf   : > { %s2512_s10 = scalar_lea.vmem %s2511_s5, 32  ;;  %p2513_p1 = scmp.lt.s32.totalorder %s605_s21, %s2511_s5 }
  0xd0   : > { %p2508_p0 = pnand %p2506_p13, %p2940_p11  ;;  %p2514_p8 = scmp.lt.s32.totalorder %s2512_s10, %s2505_s8 }
  0xd2   : > { %p2509_p6 = pneg %p2508_p0  ;;  %p2515_p9 = por %p2514_p8, %p2513_p1 }
  0xd4   : > { %p2516_p5 = pnand %p2515_p9, %p2509_p6 }
  0xd6   : > { %2519 = shalt.err (!%p2516_p5)
}
  0xd7   : > { %p3654_p7 = scmp.ne.s32.totalorder %s3619_s15, 0  ;;  %s3655_s2 = sld [smem:[#allocation36_spill]] }
  0xd9   : > { %2201 = dma.hbm_to_vmem [thread:$0]  (!%p3654_p7), %s3150_s26, 16, %s605_s21, %s2981_s1  }
  0xdd   : > { %p3656_p4 = scmp.ne.s32.totalorder %s3655_s2, 0 }
  0xde   : > { %s3174_s29 = sand.u32 (!%p3656_p4), 1, %s2682_s25   ;;  %p3657_p11 = scmp.ne.s32.totalorder (!%p3656_p4), %s3633_s14, 0 }
  0xdf   : > { %639 = sbr.rel (%p3656_p4) target bundleno = 2829 (0xb0d), region = 76  ;;  %s3574_s30 = sshll.u32 (!%p3656_p4), %s3174_s29, 3 }
  0xe0   : > { %s642_s28 = scalar_lea.sflag (!%p3656_p4), [#allocation4], %s3174_s29  ;;  %s3180_s7 = scalar_lea.vmem (!%p3656_p4), [#allocation3], %s3574_s30 }
  0xe6   : > { %2633 = dma.done.wait (%p3657_p11), %s642_s28, 128  }
  0xe7   : > { %2635 = vsyncadd (%p3657_p11), %s642_s28, 4294967168  ;;  %s650_s15 = sand.u32 1, %s3002_s9   ;;  %s3188_s1 = sand.u32 1, %s2670_s22  }
  0xe8   : > { %s651_s26 = scalar_lea.sflag [#allocation7], %s650_s15  ;;  %p3658_p9 = scmp.ne.s32.totalorder %s3635_s17, 0 }
  0xea   : > { %2637 = dma.done.wait (%p3658_p9), %s651_s26, 32  }
  0xeb   : > { %2639 = vsyncadd (%p3658_p9), %s651_s26, 4294967264  ;;  %s667_s14 = scalar_lea.sflag [#allocation10], %s650_s15 }
  0xec   : > { %2641 = dma.done.wait (%p3658_p9), %s667_s14, 32  }
  0xed   : > { %2643 = vsyncadd (%p3658_p9), %s667_s14, 4294967264  ;;  %s3659_s9 = sld [smem:[#allocation29_spill]]  ;;  %s3660_s13 = sld [smem:[#allocation28_spill]] }
  0xee   : > { %s3573_s27 = sand.u32 1, %s2658_s19   ;;  %s3663_s21 = sld [smem:[#allocation46_spill]] }
  0xef   : > { %s1997_s8 = sshll.u32 %s3573_s27, 4  ;;  %s3664_s12 = sld [smem:[#allocation48_spill]] }
  0xf0   : > { %s3665_s22 = sld [smem:[#allocation52_spill]]  ;;  %s3666_s24 = sld [smem:[#allocation54_spill]] }
  0xf1   : > { %s3667_s20 = sld [smem:[#allocation55_spill]]  ;;  %s3668_s0 = sld [smem:[#allocation56_spill]] }
  0xf2   : > { %s3669_s23 = sld [smem:[#allocation57_spill]]  ;;  %s3257_s19 = scalar_lea.vmem [#allocation13], %s1997_s8 }
  0xf3   : > { %p780_p3 = scmp.lt.s32.totalorder %s3659_s9, 1  ;;  %p783_p2 = scmp.lt.s32.totalorder %s3660_s13, 1 }
  0xf4   : > { %p2006_p10 = scmp.ne.s32.totalorder %s3660_s13, 0 }
  0xf5   : > { %s3721_s9 = smov (!%p780_p3, %s3659_s9), 1  ;;  %v820_v0 = vld [vmem:[%s3180_s7] sm:$0xff] (!%p2006_p10)  ;;  %vm821_vm0 = vcmask (!%p2006_p10), 261120  }
  0xf6   : > { %s3210_s11 = scalar_select %p783_p2, %s3660_s13, 1 }
  0xf8   : > { %s2051_s28 = sshll.u32 %s3210_s11, 4  ;;  %s2054_s10 = sshll.u32 %s3210_s11, 5 }
  0xf9   : > { %s787_s30 = scalar_lea.vmem %s3663_s21, %s2051_s28  ;;  %s3227_s17 = scalar_lea.vmem %s3664_s12, %s2051_s28 }
  0xfa   : > { %s3232_s3 = scalar_lea.vmem %s3665_s22, %s2051_s28  ;;  %s3238_s15 = scalar_lea.vmem %s3666_s24, %s2054_s10 }
  0xfb   : > { %s808_s21 = scalar_lea.vmem %s3667_s20, %s3210_s11  ;;  %s811_s6 = scalar_lea.vmem %s3668_s0, %s3210_s11 }
  0xfc   : > { %s814_s25 = scalar_lea.vmem %s3669_s23, %s3210_s11  ;;  %s677_s22 = scalar_lea.vmem [#allocation11], %s3188_s1 }
  0xfd   : > { %s3670_s28 = sshll.u32 %s3174_s29, 3  ;;  %819 = sbr.rel (%p2006_p10) target bundleno = 260 (0x104), region = 100 }
  0xfe   : > { %s3255_s5 = scalar_lea.vmem [#allocation12], %s3670_s28 }
  0xff   : > { %822 = vst.msk [vmem:[%s3255_s5] sm:$0xff] (!%p2006_p10), %vm821_vm0, %v820_v0 }
 0x104 PF: > { %v2340_v1 = vld [vmem:[%s787_s30] sm:$0xff]   ;;  %v2713_v2 = vmov 0.0   ;;  %v2341_v3 = vld [vmem:[%s787_s30 + $0x8] sm:$0xff]   ;;  %vm2714_vm1 = vmmov 0   ;;  %vm857_vm2 = vcmask 261120   ;;  %s3671_s16 = sld [smem:[#allocation47_spill]]  ;;  %v829_v26 = vlaneseq }
 0x105   : > { %2088 = vmatprep.subr.bf16.mxu0 %v2713_v2  ;;  %2096 = vmatprep.subr.bf16.mxu1 %v2713_v2  ;;  %s2715_s30 = smov 96   ;;  %s2716_s7 = smov 120   ;;  %vm907_vm3 = vcmask 64512   ;;  %vm966_vm5 = vcmask 60416   ;;  %vm973_vm6 = vcmask 1043456   ;;  %vm1139_vm7 = vcmask 126016  }
 0x106   : > { %2089 = vmatpush3.bf16.msra.mxu0 %v2340_v1  ;;  %2092 = vmatprep.mubr.msk.bf16.mxu0 %vm2714_vm1, %v2713_v2  ;;  %v3267_v4 = vld [vmem:[%s3255_s5] sm:$0xff]  ;;  %s2717_s13 = smov 88   ;;  %s2718_s27 = smov 80   ;;  %v830_v28 = vshrl.u32 %v829_v26, 7  ;;  %vm1260_vm8 = vcmask 191616   ;;  %vm1381_vm9 = vcmask 257216  }
 0x107   : > { %2090 = vmatprep.subr.bf16.mxu0 %v2713_v2  ;;  %2098 = vmatprep.mubr.msk.bf16.mxu1 %vm2714_vm1, %v2713_v2  ;;  %v824_v5 = vpack.c.bf16 %v3267_v4, %v3267_v4  ;;  %s2719_s8 = smov 112   ;;  %s2720_s2 = smov 72   ;;  %vm1589_vm10 = vcmask 523264  }
 0x108   : > { %s2721_s10 = smov 104   ;;  %s3673_s20 = sld [smem:[#allocation45_spill]]  ;;  %v831_v29 = vsub.s32 0, %v830_v28 }
 0x109   : > { %s2723_s0 = smov 64   ;;  %s2724_s12 = smov 40  }
 0x10a   : > { %2091 = vmatpush3.bf16.msra.mxu0 %v2341_v3  ;;  %s3672_s23 = scalar_lea.vmem %s3671_s16, %s3210_s11  ;;  %s2725_s28 = smov 48  }
 0x10b   : > { %2102 = vmatprep.subr.bf16.mxu0 %v2713_v2  ;;  %v2007_v6 = vld [vmem:[%s3672_s23] ss:$0 sm:$0xff]  ;;  %s2726_s18 = smov 8   ;;  %s2727_s24 = smov 16  }
 0x10c   : > { %s2728_s16 = smov 24   ;;  %s3676_s23 = scalar_lea.vmem [#allocation8], %s3188_s1 }
 0x10d   : > { %2093 = vmatmul.mubr.msk.bf16.vlgmr.msra.gmra.mrb[0].mxu0 %vm857_vm2, %v824_v5  ;;  %s1698_s26 = sshll.u32 %s3257_s19, 4  ;;  %s3401_s26 = int_to_ptr.vmem [resolvable:$true] %s1698_s26 }
 0x10e   : > { %2104 = vmatprep.mubr.msk.bf16.mxu0 %vm2714_vm1, %v2713_v2  ;;  %s3674_s4 = scalar_lea.vmem %s3673_s20, %s3721_s9  ;;  %s2722_s9 = smov 56  }
 0x10f   : > { %v825_v27 = vld [vmem:[%s3674_s4] sm:$0x1]  ;;  %s3683_s4 = sld [smem:[#allocation59_spill]] }
 0x110   : > { %vm826_vm4 = vcmp.eq.f32.partialorder %v825_v27, 0.0 }
 0x111   : > { %v827_v30 = vsel %vm826_vm4, -1e+10, %v2713_v2 }
 0x112   : > { %v832_v31 = vrot.slane %v827_v30, %v831_v29 }
 0x1e0   : > { %v895_v7 = vpop.f32.mrb[0].mxu0 }
 0x1e1   : > { %v896_v8 = vadd.f32 %v2007_v6, %v895_v7  ;;  %v2094_v9 = vpop.f32.mrb[1].mxu0 }
 0x1e2   : > { %v898_v10 = vpop.f32.mrb[2].mxu0 }
 0x1e3   : > { %v901_v11 = vmul.f32 0.35355338, %v896_v8  ;;  %v3283_v12 = vpack.c.bf16 %v896_v8, %v896_v8  ;;  %v2095_v13 = vpop.f32.mrb[3].mxu0 }
 0x1e5   : > { %v902_v14 = vpack.c.bf16 %v901_v11, %v901_v11  ;;  %905 = vrot.lane.b32.xlu0 %v3283_v12, %s2715_s30 }
 0x1e7   : > { %1020 = vrot.lane.b32.xlu1 %v902_v14, %s2716_s7 }
 0x1e9   : > { %1022 = vrot.lane.b32.xlu0 %v3283_v12, %s2717_s13 }
 0x1eb   : > { %1143 = vrot.lane.b32.xlu1 %v3283_v12, %s2718_s27  ;;  %s3679_s27 = sld [smem:[#allocation29_spill]] }
 0x1ed   : > { %1141 = vrot.lane.b32.xlu0 %v902_v14, %s2719_s8  ;;  %s3680_s8 = sld [smem:[#allocation28_spill]] }
 0x1ef   : > { %1264 = vrot.lane.b32.xlu1 %v3283_v12, %s2720_s2 }
 0x1f1   : > { %1262 = vrot.lane.b32.xlu0 %v902_v14, %s2721_s10 }
 0x257   : > { %v906_v15 = vpop.permute.xlu0 %905 }
 0x258   : > { %v912_v16 = vsel %vm907_vm3, %v906_v15, 0 }
 0x259   : > { %2097 = vmatpush3.bf16.xpose.msra.mxu1 %v912_v16  ;;  %v1021_v18 = vpop.permute.xlu1 %1020 }
 0x25a   : > { %2108 = vmatprep.subr.bf16.mxu1 %v2713_v2 }
 0x25b   : > { %v1023_v17 = vpop.permute.xlu0 %1022 }
 0x25c   : > { %v1028_v19 = vsel %vm907_vm3, %v1023_v17, 0 }
 0x25d   : > { %v1144_v20 = vpop.permute.xlu1 %1143 }
 0x25e   : > { %v1149_v21 = vsel %vm907_vm3, %v1144_v20, 0 }
 0x25f   : > { %v1142_v23 = vpop.permute.xlu0 %1141 }
 0x260   : > { %2099 = vmatmul.mubr.msk.bf16.vlgmr.msra.gmra.mrb[0].mxu1 %vm907_vm3, %v902_v14 }
 0x261   : > { %2109 = vmatpush3.bf16.xpose.msra.mxu1 %v1028_v19  ;;  %2110 = vmatprep.mubr.msk.bf16.mxu1 %vm2714_vm1, %v2713_v2  ;;  %v1265_v22 = vpop.permute.xlu1 %1264 }
 0x262   : > { %2120 = vmatprep.subr.bf16.mxu1 %v2713_v2  ;;  %v1270_v24 = vsel %vm907_vm3, %v1265_v22, 0 }
 0x263   : > { %v1263_v25 = vpop.permute.xlu0 %1262 }
 0x268   : > { %2111 = vmatmul.mubr.msk.bf16.vlgmr.msra.gmra.mrb[4].mxu1 %vm907_vm3, %v1021_v18 }
 0x269   : > { %2121 = vmatpush3.bf16.xpose.msra.mxu1 %v1149_v21  ;;  %2122 = vmatprep.mubr.msk.bf16.mxu1 %vm2714_vm1, %v2713_v2 }
 0x26a   : > { %2132 = vmatprep.subr.bf16.mxu1 %v2713_v2 }
 0x270   : > { %2123 = vmatmul.mubr.msk.bf16.vlgmr.msra.gmra.mrb[8].mxu1 %vm907_vm3, %v1142_v23 }
 0x271   : > { %2133 = vmatpush3.bf16.xpose.msra.mxu1 %v1270_v24  ;;  %2134 = vmatprep.mubr.msk.bf16.mxu1 %vm2714_vm1, %v2713_v2 }
 0x272   : > { %2144 = vmatprep.subr.bf16.mxu1 %v2713_v2 }
 0x278   : > { %2135 = vmatmul.mubr.msk.bf16.vlgmr.msra.gmra.mrb[12].mxu1 %vm907_vm3, %v1263_v25 }
 0x279   : > { %2148 = vmatprep.mubr.msk.bf16.mxu1 %vm2714_vm1, %v2713_v2 }
 0x333   : > { %v948_v32 = vpop.f32.mrb[0].mxu1 }
 0x334   : > { %v949_v33 = vadd.f32 %v948_v32, %v832_v31  ;;  %v2100_v34 = vpop.f32.mrb[1].mxu1 }
 0x335   : > { %v951_v35 = vpop.f32.mrb[2].mxu1 }
 0x336   : > { %v2101_v36 = vpop.f32.mrb[3].mxu1  ;;  %v954_v37 = vsel %vm907_vm3, %v949_v33, -inf }
 0x337   : > { %955 = vmax.xlane.f32.xlu1 %v954_v37 }
 0x33b   : > { %v1064_v38 = vpop.f32.mrb[4].mxu1 }
 0x33c   : > { %v1065_v39 = vadd.f32 %v1064_v38, %v832_v31  ;;  %v2112_v40 = vpop.f32.mrb[5].mxu1 }
 0x33d   : > { %v1067_v41 = vpop.f32.mrb[6].mxu1 }
 0x33e   : > { %v2113_v42 = vpop.f32.mrb[7].mxu1  ;;  %v1070_v43 = vsel %vm907_vm3, %v1065_v39, -inf }
 0x33f   : > { %1071 = vmax.xlane.f32.xlu0 %v1070_v43 }
 0x343   : > { %v1185_v44 = vpop.f32.mrb[8].mxu1 }
 0x344   : > { %v1186_v45 = vadd.f32 %v1185_v44, %v832_v31  ;;  %v2124_v46 = vpop.f32.mrb[9].mxu1 }
 0x345   : > { %v1188_v47 = vpop.f32.mrb[10].mxu1 }
 0x346   : > { %v2125_v48 = vpop.f32.mrb[11].mxu1  ;;  %v1191_v49 = vsel %vm907_vm3, %v1186_v45, -inf }
 0x347   : > { %1192 = vmax.xlane.f32.xlu0 %v1191_v49  ;;  %v2342_v48 = vld [vmem:[%s3227_s17] sm:$0xff]   ;;  %v2343_v49 = vld [vmem:[%s3227_s17 + $0x8] sm:$0xff]   ;;  %s3675_s17 = scalar_lea.vmem [#allocation6], %s3188_s1 }
 0x348   : > { %2145 = vmatpush3.bf16.msra.mxu1 %v2342_v48 }
 0x349   : > { %2146 = vmatprep.subr.bf16.mxu1 %v2713_v2 }
 0x34b   : > { %v1306_v50 = vpop.f32.mrb[12].mxu1 }
 0x34c   : > { %v1307_v51 = vadd.f32 %v1306_v50, %v832_v31  ;;  %v2136_v52 = vpop.f32.mrb[13].mxu1  ;;  %2147 = vmatpush3.bf16.msra.mxu1 %v2343_v49 }
 0x34d   : > { %v1309_v53 = vpop.f32.mrb[14].mxu1  ;;  %2160 = vmatprep.subr.bf16.mxu1 %v2713_v2 }
 0x34e   : > { %v2137_v54 = vpop.f32.mrb[15].mxu1  ;;  %v1312_v55 = vsel %vm907_vm3, %v1307_v51, -inf }
 0x34f   : > { %1313 = vmax.xlane.f32.xlu1 %v1312_v55 }
 0x3c4   : > { %v956_v56 = vpop.xlane.xlu1 %955 }
 0x3c5   : > { %v957_v57 = vsub.f32 %v949_v33, %v956_v56 }
 0x3c7   : > { %v958_v58 = vmul.f32 1.442695, %v957_v57 }
 0x3c9   : > { %2350 = vpow2.f32 %v958_v58 }
 0x3cc   : > { %v1072_v59 = vpop.xlane.xlu0 %1071 }
 0x3cd   : > { %v1073_v60 = vsub.f32 %v1065_v39, %v1072_v59 }
 0x3cf   : > { %v1074_v61 = vmul.f32 1.442695, %v1073_v60 }
 0x3d1   : > { %2352 = vpow2.f32 %v1074_v61 }
 0x3d3   : > { %v2351_v62 = vpop.eup %2350 }
 0x3d4   : > { %v1193_v63 = vpop.xlane.xlu0 %1192  ;;  %v960_v0 = vsel %vm907_vm3, %v2351_v62, 0.0 }
 0x3d5   : > { %v1194_v1 = vsub.f32 %v1186_v45, %v1193_v63  ;;  %961 = vadd.xlane.f32.xlu0 %v960_v0  ;;  %v2025_v0 = vld [vmem:[%s3675_s17] ss:$0 sm:$0xff] }
 0x3d7   : > { %v1195_v3 = vmul.f32 1.442695, %v1194_v1 }
 0x3d9   : > { %2354 = vpow2.f32 %v1195_v3 }
 0x3db   : > { %v2353_v5 = vpop.eup %2352 }
 0x3dc   : > { %v1076_v6 = vsel %vm907_vm3, %v2353_v5, 0.0  ;;  %v1314_v9 = vpop.xlane.xlu1 %1313 }
 0x3dd   : > { %1077 = vadd.xlane.f32.xlu1 %v1076_v6  ;;  %v1315_v10 = vsub.f32 %v1307_v51, %v1314_v9 }
 0x3df   : > { %v1316_v11 = vmul.f32 1.442695, %v1315_v10 }
 0x3e1   : > { %2356 = vpow2.f32 %v1316_v11 }
 0x3e3   : > { %v2355_v7 = vpop.eup %2354 }
 0x3e4   : > { %v1197_v8 = vsel %vm907_vm3, %v2355_v7, 0.0 }
 0x3e5   : > { %1198 = vadd.xlane.f32.xlu0 %v1197_v8 }
 0x3eb   : > { %v2357_v13 = vpop.eup %2356 }
 0x3ec   : > { %v1318_v14 = vsel %vm907_vm3, %v2357_v13, 0.0 }
 0x3ee   : > { %1084 = vrot.lane.b32.xlu1 %v3283_v12, %s2722_s9 }
 0x3fb   : > { %968 = vrot.lane.b32.xlu0 %v3283_v12, %s2723_s0 }
 0x3ff   : > { %1326 = vrot.lane.b32.xlu0 %v3283_v12, %s2724_s12 }
 0x412   : > { %1319 = vadd.xlane.f32.xlu1 %v1318_v14 }
 0x423   : > { %1205 = vrot.lane.b32.xlu1 %v3283_v12, %s2725_s28 }
 0x462   : > { %v962_v15 = vpop.xlane.xlu0 %961 }
 0x463   : > { %2358 = vrcp.f32 %v962_v15 }
 0x46a   : > { %v1078_v16 = vpop.xlane.xlu1 %1077 }
 0x46b   : > { %2360 = vrcp.f32 %v1078_v16  ;;  %v2344_v16 = vld [vmem:[%s3232_s3] sm:$0xff]  }
 0x46d   : > { %v2359_v17 = vpop.eup %2358 }
 0x46e   : > { %v964_v18 = vmul.f32 %v2359_v17, %v2351_v62  ;;  %v1085_v24 = vpop.permute.xlu1 %1084  ;;  %v2345_v17 = vld [vmem:[%s3232_s3 + $0x8] sm:$0xff]   ;;  %s3677_s3 = scalar_lea.vmem [#allocation9], %s3188_s1  ;;  %s3681_s1 = sld [smem:[#allocation21_spill]] }
 0x46f   : > { %v1090_v26 = vsel %vm973_vm6, %v1085_v24, 0  ;;  %v2030_v24 = vld [vmem:[%s3677_s3] ss:$0 sm:$0xff] }
 0x470   : > { %v965_v19 = vpack.c.bf16 %v964_v18, %v964_v18  ;;  %v2347_v18 = vld [vmem:[%s3238_s15 + $0x8] sm:$0xff]  }
 0x472   : > { %v1199_v20 = vpop.xlane.xlu0 %1198  ;;  %967 = vst.msk [vmem:[%s3257_s19] sm:$0xf] %vm966_vm5, %v965_v19 }
 0x473   : > { %2362 = vrcp.f32 %v1199_v20 }
 0x474   : > { %s3684_s12 = sand.u32 1, %s3681_s1  }
 0x475   : > { %v2361_v21 = vpop.eup %2360  ;;  %s3405_s28 = scalar_lea.sflag [#allocation14], %s3684_s12 }
 0x476   : > { %v1080_v22 = vmul.f32 %v2361_v21, %v2353_v5  ;;  %v969_v23 = vpop.permute.xlu0 %968 }
 0x477   : > { %v975_v12 = vsel %vm973_vm6, %v969_v23, 0  ;;  %v2029_v23 = vld [vmem:[%s3676_s23] ss:$0 sm:$0xff] }
 0x478   : > { %2103 = vmatpush3.bf16.msra.mxu0 %v975_v12  ;;  %v1081_v25 = vpack.c.bf16 %v1080_v22, %v1080_v22 }
 0x479   : > { %2114 = vmatprep.subr.bf16.mxu0 %v2713_v2 }
 0x47a   : > { %2014 = vst.msk [vmem:[%s3257_s19 + $0x4] sm:$0xf] %vm966_vm5, %v1081_v25  ;;  %v1327_v33 = vpop.permute.xlu0 %1326 }
 0x47b   : > { %2105 = vmatmul.mubr.msk.bf16.vlgmr.msra.gmra.mrb[4].mxu0 %vm907_vm3, %v965_v19  ;;  %v1332_v34 = vsel %vm973_vm6, %v1327_v33, 0 }
 0x47c   : > { %2115 = vmatpush3.bf16.msra.mxu0 %v1090_v26  ;;  %2116 = vmatprep.mubr.msk.bf16.mxu0 %vm2714_vm1, %v2713_v2 }
 0x47d   : > { %v2363_v27 = vpop.eup %2362  ;;  %2126 = vmatprep.subr.bf16.mxu0 %v2713_v2 }
 0x47e   : > { %v1201_v28 = vmul.f32 %v2363_v27, %v2355_v7 }
 0x480   : > { %v1202_v29 = vpack.c.bf16 %v1201_v28, %v1201_v28  ;;  %v2348_v28 = vld [vmem:[%s3238_s15 + $0x10] sm:$0xff]  }
 0x482   : > { %2018 = vst.msk [vmem:[%s3257_s19 + $0x8] sm:$0xf] %vm966_vm5, %v1202_v29 }
 0x483   : > { %2117 = vmatmul.mubr.msk.bf16.vlgmr.msra.gmra.mrb[8].mxu0 %vm907_vm3, %v1081_v25 }
 0x484   : > { %2128 = vmatprep.mubr.msk.bf16.mxu0 %vm2714_vm1, %v2713_v2 }
 0x49f   : > { %v1320_v30 = vpop.xlane.xlu1 %1319 }
 0x4a0   : > { %2364 = vrcp.f32 %v1320_v30  ;;  %v2031_v30 = vld [vmem:[%s677_s22] ss:$0 sm:$0xff]  ;;  %s2047_s22 = sshll.u32 %s3680_s8, 3 }
 0x4a3   : > { %v1206_v31 = vpop.permute.xlu1 %1205 }
 0x4a4   : > { %v1211_v32 = vsel %vm973_vm6, %v1206_v31, 0 }
 0x4a5   : > { %2127 = vmatpush3.bf16.msra.mxu0 %v1211_v32 }
 0x4a6   : > { %2138 = vmatprep.subr.bf16.mxu0 %v2713_v2 }
 0x4a8   : > { %2129 = vmatmul.mubr.msk.bf16.vlgmr.msra.gmra.mrb[12].mxu0 %vm907_vm3, %v1202_v29  ;;  %v2349_v29 = vld [vmem:[%s3238_s15 + $0x18] sm:$0xff]  }
 0x4a9   : > { %2139 = vmatpush3.bf16.msra.mxu0 %v1332_v34  ;;  %2140 = vmatprep.mubr.msk.bf16.mxu0 %vm2714_vm1, %v2713_v2 }
 0x4aa   : > { %v2365_v35 = vpop.eup %2364  ;;  %2152 = vmatprep.subr.bf16.mxu0 %v2713_v2 }
 0x4ab   : > { %v1322_v36 = vmul.f32 %v2365_v35, %v2357_v13 }
 0x4ad   : > { %v1323_v37 = vpack.c.bf16 %v1322_v36, %v1322_v36 }
 0x4af   : > { %2022 = vst.msk [vmem:[%s3257_s19 + $0xc] sm:$0xf] %vm966_vm5, %v1323_v37 }
 0x4b0   : > { %2141 = vmatmul.mubr.msk.bf16.vlgmr.msra.gmra.mrb[16].mxu0 %vm907_vm3, %v1323_v37 }
 0x4b1   : > { %2156 = vmatprep.mubr.msk.bf16.mxu0 %vm2714_vm1, %v2713_v2  ;;  %2153 = vmatpush3.bf16.msra.mxu0 %v2344_v16 }
 0x4b2   : > { %2154 = vmatprep.subr.bf16.mxu0 %v2713_v2 }
 0x4b5   : > { %2155 = vmatpush3.bf16.msra.mxu0 %v2345_v17 }
 0x54e   : > { %v1011_v38 = vpop.f32.mrb[4].mxu0 }
 0x54f   : > { %v1017_v39 = vpack.c.bf16 %v1011_v38, %v1011_v38  ;;  %v2106_v40 = vpop.f32.mrb[5].mxu0  ;;  %v2035_v38 = vld [vmem:[%s808_s21] ss:$0 sm:$0xff]  ;;  %s2046_s21 = sshll.u32 %s3679_s27, 2 }
 0x550   : > { %v1014_v41 = vpop.f32.mrb[6].mxu0  ;;  %s1695_s2 = sadd.s32 %s2047_s22, %s2046_s21 }
 0x551   : > { %1018 = vst.msk [vmem:[#allocation2] sm:$0xf] %vm966_vm5, %v1017_v39  ;;  %v2107_v42 = vpop.f32.mrb[7].mxu0  ;;  %s2048_s10 = sshll.u32 %s1695_s2, 6 }
 0x552   : > { %s3399_s9 = scalar_lea.hbm %s3683_s4, %s2048_s10 }
 0x556   : > { %v1126_v43 = vpop.f32.mrb[8].mxu0 }
 0x557   : > { %v2055_v44 = vpack.c.bf16 %v1126_v43, %v1126_v43  ;;  %v2118_v45 = vpop.f32.mrb[9].mxu0 }
 0x558   : > { %v1129_v46 = vpop.f32.mrb[10].mxu0 }
 0x559   : > { %1136 = vrot.lane.b32.xlu1 %v2055_v44, %s2726_s18  ;;  %v2119_v47 = vpop.f32.mrb[11].mxu0  ;;  %s2520_s18 = scalar_lea.vmem %s3401_s26, 256 }
 0x55a   : > { %p2521_p12 = scmp.ne.s32.totalorder %s3401_s26, %s2520_s18 }
 0x57b   : > { %v1247_v50 = vpop.f32.mrb[12].mxu0 }
 0x57c   : > { %v2056_v51 = vpack.c.bf16 %v1247_v50, %v1247_v50  ;;  %v2130_v52 = vpop.f32.mrb[13].mxu0 }
 0x57d   : > { %v1250_v53 = vpop.f32.mrb[14].mxu0 }
 0x57e   : > { %1257 = vrot.lane.b32.xlu0 %v2056_v51, %s2727_s24  ;;  %v2131_v54 = vpop.f32.mrb[15].mxu0  ;;  %s2729_s24 = smov [#allocation13]  }
 0x57f   : > { %s2524_s19 = sshll.u32 %s2729_s24, 4  ;;  %s2525_s19 = int_to_ptr.vmem [resolvable:$false] %s2524_s19 }
 0x580   : > { %p2527_p1 = scmp.lt.s32.totalorder %s3401_s26, %s2525_s19 }
 0x583   : > { %v1368_v55 = vpop.f32.mrb[16].mxu0 }
 0x584   : > { %v2057_v56 = vpack.c.bf16 %v1368_v55, %v1368_v55  ;;  %v2142_v57 = vpop.f32.mrb[17].mxu0 }
 0x585   : > { %v1371_v58 = vpop.f32.mrb[18].mxu0 }
 0x586   : > { %1378 = vrot.lane.b32.xlu1 %v2057_v56, %s2728_s16  ;;  %v2143_v59 = vpop.f32.mrb[19].mxu0  ;;  %s2526_s16 = scalar_lea.vmem %s2525_s19, 512 }
 0x587   : > { %p2528_p8 = scmp.lt.s32.totalorder %s2526_s16, %s2520_s18 }
 0x589   : > { %p2529_p5 = por %p2528_p8, %p2527_p1 }
 0x5cb   : > { %v1137_v60 = vpop.permute.xlu1 %1136 }
 0x5cc   : > { %1140 = vst.msk [vmem:[#allocation2] sm:$0xf] %vm1139_vm7, %v1137_v60 }
 0x5f0   : > { %v1258_v61 = vpop.permute.xlu0 %1257 }
 0x5f1   : > { %1261 = vst.msk [vmem:[#allocation2] sm:$0xf] %vm1260_vm8, %v1258_v61 }
 0x5f8   : > { %v1379_v62 = vpop.permute.xlu1 %1378 }
 0x5f9   : > { %1382 = vst.msk [vmem:[#allocation2] sm:$0xf] %vm1381_vm9, %v1379_v62 }
 0x600   : > { %v1383_v63 = vld [vmem:[#allocation2] sm:$0xf] }
 0x601   : > { %2149 = vmatmul.mubr.msk.bf16.vlgmr.msra.gmra.mrb[16].mxu1 %vm857_vm2, %v1383_v63 }
 0x602   : > { %2168 = vmatprep.mubr.msk.bf16.mxu1 %vm2714_vm1, %v2713_v2 }
 0x6d4   : > { %v1444_v1 = vpop.f32.mrb[16].mxu1 }
 0x6d5   : > { %v1445_v3 = vadd.f32 %v2025_v0, %v1444_v1  ;;  %v2150_v5 = vpop.f32.mrb[17].mxu1 }
 0x6d6   : > { %v1447_v6 = vpop.f32.mrb[18].mxu1 }
 0x6d7   : > { %v2151_v7 = vpop.f32.mrb[19].mxu1  ;;  %v1450_v8 = vadd.f32 %v1445_v3, %v3267_v4  ;;  %v2346_v4 = vld [vmem:[%s3238_s15] sm:$0xff]   ;;  %s3682_s15 = sld [smem:[#allocation42_spill]] }
 0x6d8   : > { %2161 = vmatpush3.bf16.msra.mxu1 %v2346_v4 }
 0x6d9   : > { %v1451_v9 = vsel %vm857_vm2, %v1450_v8, 0.0  ;;  %2162 = vmatprep.subr.bf16.mxu1 %v2713_v2 }
 0x6da   : > { %1452 = vadd.xlane.f32.xlu0 %v1451_v9 }
 0x6dc   : > { %2163 = vmatpush3.bf16.msra.mxu1 %v2347_v18 }
 0x6dd   : > { %2164 = vmatprep.subr.bf16.mxu1 %v2713_v2  ;;  %p3685_p13 = scmp.ne.s32.totalorder %s3682_s15, 0 }
 0x6df   : > { %p2522_p0 = pnand %p2521_p12, %p3685_p13 }
 0x6e0   : > { %2165 = vmatpush3.bf16.msra.mxu1 %v2348_v28 }
 0x6e1   : > { %2166 = vmatprep.subr.bf16.mxu1 %v2713_v2  ;;  %p2523_p6 = pneg %p2522_p0 }
 0x6e3   : > { %p2530_p7 = pnand %p2529_p5, %p2523_p6 }
 0x6e4   : > { %2167 = vmatpush3.bf16.msra.mxu1 %v2349_v29 }
 0x767   : > { %v1453_v10 = vpop.xlane.xlu0 %1452 }
 0x768   : > { %v1455_v11 = vmul.f32 0.03125, %v1453_v10 }
 0x76a   : > { %v1456_v13 = vsub.f32 %v1450_v8, %v1455_v11 }
 0x76c   : > { %v1457_v14 = vmul.f32 %v1456_v13, %v1456_v13 }
 0x76e   : > { %v1458_v15 = vsel %vm857_vm2, %v1457_v14, 0.0 }
 0x76f   : > { %1459 = vadd.xlane.f32.xlu1 %v1458_v15 }
 0x7fc   : > { %v1460_v19 = vpop.xlane.xlu1 %1459 }
 0x7fd   : > { %v1461_v20 = vmul.f32 0.03125, %v1460_v19 }
 0x7ff   : > { %v1462_v21 = vadd.f32 1e-05, %v1461_v20 }
 0x801   : > { %2366 = vrsqrt.f32 %v1462_v21 }
 0x80b   : > { %v2367_v22 = vpop.eup %2366 }
 0x80c   : > { %v1464_v12 = vmul.f32 %v2367_v22, %v1456_v13 }
 0x80e   : > { %v1472_v25 = vmul.f32 %v2029_v23, %v1464_v12 }
 0x810   : > { %v1480_v26 = vadd.f32 %v2030_v24, %v1472_v25 }
 0x812   : > { %v1481_v27 = vpack.c.bf16 %v1480_v26, %v1480_v26 }
 0x814   : > { %2157 = vmatmul.mubr.msk.bf16.vlgmr.msra.gmra.mrb[20].mxu0 %vm857_vm2, %v1481_v27 }
 0x8e7   : > { %v1542_v31 = vpop.f32.mrb[20].mxu0 }
 0x8e8   : > { %v1543_v32 = vadd.f32 %v2031_v30, %v1542_v31  ;;  %v2158_v33 = vpop.f32.mrb[21].mxu0 }
 0x8e9   : > { %v1545_v34 = vpop.f32.mrb[22].mxu0 }
 0x8ea   : > { %v1548_v35 = vmax.f32 %v1543_v32, 0.0  ;;  %v2159_v36 = vpop.f32.mrb[23].mxu0 }
 0x8ec   : > { %v1549_v37 = vpack.c.bf16 %v1548_v35, %v1548_v35 }
 0x8ee   : > { %2169 = vmatmul.mubr.msk.bf16.vlgmr.msra.gmra.mrb[20].mxu1 %vm1589_vm10, %v1549_v37 }
 0x9c1   : > { %v1627_v2 = vpop.f32.mrb[20].mxu1 }
 0x9c2   : > { %v1628_v39 = vadd.f32 %v2035_v38, %v1627_v2  ;;  %v2170_v40 = vpop.f32.mrb[21].mxu1 }
 0x9c3   : > { %v1630_v41 = vpop.f32.mrb[22].mxu1 }
 0x9c4   : > { %v2171_v42 = vpop.f32.mrb[23].mxu1  ;;  %v1633_v43 = vadd.f32 %v1628_v39, %v1480_v26 }
 0x9c6   : > { %v1634_v44 = vsel %vm857_vm2, %v1633_v43, 0.0 }
 0x9c7   : > { %1635 = vadd.xlane.f32.xlu0 %v1634_v44 }
 0xa54   : > { %v1636_v45 = vpop.xlane.xlu0 %1635 }
 0xa55   : > { %v1637_v46 = vmul.f32 0.03125, %v1636_v45 }
 0xa57   : > { %v1638_v47 = vsub.f32 %v1633_v43, %v1637_v46 }
 0xa59   : > { %v1639_v48 = vmul.f32 %v1638_v47, %v1638_v47 }
 0xa5b   : > { %v1640_v49 = vsel %vm857_vm2, %v1639_v48, 0.0 }
 0xa5c   : > { %1641 = vadd.xlane.f32.xlu0 %v1640_v49 }
 0xa5d   : > { %2533 = shalt.err (!%p2530_p7)
}
 0xa5e   : > { %s2534_s17 = scalar_lea.hbm %s3399_s9, 256  ;;  %s2538_s30 = scalar_lea.hbm %s3683_s4, 1024 }
 0xa5f   : > { %p2535_p4 = scmp.ne.s32.totalorder %s3399_s9, %s2534_s17  ;;  %p2539_p3 = scmp.lt.u32.totalorder %s3399_s9, %s3683_s4 }
 0xa60   : > { %p2540_p2 = scmp.lt.u32.totalorder %s2538_s30, %s2534_s17  ;;  %p2542_p12 = scmp.lt.u32.totalorder %s2534_s17, %s3399_s9 }
 0xa61   : > { %p2536_p11 = pnand %p2535_p4, %p3685_p13 }
 0xa62   : > { %p2541_p10 = por %p2540_p2, %p2539_p3 }
 0xa63   : > { %p2537_p9 = pneg %p2536_p11 }
 0xa64   : > { %p2543_p0 = por %p2542_p12, %p2541_p10 }
 0xa66   : > { %p2544_p6 = pnand %p2543_p0, %p2537_p9 }
 0xa68   : > { %2547 = shalt.err (!%p2544_p6)
}
 0xa69   : > { %s2730_s8 = smov 4   ;;  %s3686_s1 = sld [smem:[#allocation38_spill]]  ;;  %v2041_v54 = vld [vmem:[%s811_s6] ss:$0 sm:$0xff] }
 0xa6a   : > { %2183 = dma.vmem_to_hbm [thread:$0]  (%p3685_p13), %s3401_s26, 256, %s3399_s9, %s3405_s28, %s2723_s0, %s2723_s0, %s2730_s8  }
 0xa6b   : > { %v2042_v56 = vld [vmem:[%s814_s25] ss:$0 sm:$0xff]  ;;  %s2045_s20 = sshll.u32 %s3679_s27, 7  ;;  %s1683_s0 = sshll.u32 %s3255_s5, 4  ;;  %s3448_s0 = int_to_ptr.vmem [resolvable:$true] %s1683_s0 }
 0xa6c   : > { %s3689_s12 = sld [smem:[#allocation58_spill]]  ;;  %s1665_s6 = scalar_lea.sflag [#allocation5], %s3174_s29 }
 0xa6d   : > { %s2548_s18 = scalar_lea.vmem %s3448_s0, 128  ;;  %s2731_s11 = smov [#allocation12]  }
 0xa6e   : > { %p2549_p13 = scmp.ne.s32.totalorder %s3448_s0, %s2548_s18  ;;  %s2552_s25 = sshll.u32 %s2731_s11, 4  ;;  %s2553_s25 = int_to_ptr.vmem [resolvable:$false] %s2552_s25 }
 0xa6f   : > { %p3690_p1 = scmp.ne.s32.totalorder %s3686_s1, 0  ;;  %s2554_s27 = scalar_lea.vmem %s2553_s25, 256 }
 0xa70   : > { %p2555_p7 = scmp.lt.s32.totalorder %s3448_s0, %s2553_s25  ;;  %p2556_p4 = scmp.lt.s32.totalorder %s2554_s27, %s2548_s18 }
 0xa71   : > { %p2550_p8 = pnand %p2549_p13, %p3690_p1 }
 0xa72   : > { %s3446_s28 = scalar_lea.hbm %s3689_s12, %s2045_s20  ;;  %p2557_p11 = por %p2556_p4, %p2555_p7 }
 0xa73   : > { %p2551_p5 = pneg %p2550_p8 }
 0xa75   : > { %p2558_p9 = pnand %p2557_p11, %p2551_p5 }
 0xae9   : > { %v1642_v50 = vpop.xlane.xlu0 %1641 }
 0xaea   : > { %v1643_v51 = vmul.f32 0.03125, %v1642_v50 }
 0xaec   : > { %v1644_v52 = vadd.f32 1e-05, %v1643_v51 }
 0xaee   : > { %2368 = vrsqrt.f32 %v1644_v52 }
 0xaf8   : > { %v2369_v53 = vpop.eup %2368 }
 0xaf9   : > { %v1646_v55 = vmul.f32 %v2369_v53, %v1638_v47 }
 0xafb   : > { %v1654_v57 = vmul.f32 %v2041_v54, %v1646_v55 }
 0xafd   : > { %v1662_v58 = vadd.f32 %v2042_v56, %v1654_v57 }
 0xaff   : > { %1663 = vst.msk [vmem:[%s3255_s5] sm:$0xff] %vm857_vm2, %v1662_v58 }
 0xb00   : > { %2561 = shalt.err (!%p2558_p9)
}
 0xb01   : > { %s2562_s29 = scalar_lea.hbm %s3446_s28, 128  ;;  %s2566_s19 = scalar_lea.hbm %s3689_s12, 256 }
 0xb02   : > { %p2563_p3 = scmp.ne.s32.totalorder %s3446_s28, %s2562_s29  ;;  %p2567_p12 = scmp.lt.u32.totalorder %s3446_s28, %s3689_s12 }
 0xb03   : > { %p2568_p0 = scmp.lt.u32.totalorder %s2566_s19, %s2562_s29  ;;  %p2570_p13 = scmp.lt.u32.totalorder %s2562_s29, %s3446_s28 }
 0xb04   : > { %p2564_p2 = pnand %p2563_p3, %p3690_p1 }
 0xb05   : > { %p2569_p6 = por %p2568_p0, %p2567_p12 }
 0xb06   : > { %p2565_p10 = pneg %p2564_p2 }
 0xb07   : > { %p2571_p8 = por %p2570_p13, %p2569_p6 }
 0xb09   : > { %p2572_p5 = pnand %p2571_p8, %p2565_p10 }
 0xb0b   : > { %2575 = shalt.err (!%p2572_p5)
}
 0xb0c   : > { %2182 = dma.vmem_to_hbm [thread:$0]  (%p3690_p1), %s3448_s0, 128, %s3446_s28, %s1665_s6  }
 0xb0d PF: > { %s3691_s23 = sld [smem:[#allocation32_spill]]  ;;  %s3692_s3 = sld [smem:[#allocation25_spill]] }
 0xb0e   : > { %s3693_s30 = sld [smem:[#allocation40_spill]] }
 0xb13   : > { %p2210_p7 = scmp.ge.s32.totalorder %s3691_s23, 2  ;;  %s1713_s7 = sand.u32 1, %s3692_s3  }
 0xb14   : > { %p3694_p4 = scmp.ne.s32.totalorder %s3693_s30, 0  ;;  %s1714_s13 = scalar_lea.sflag [#allocation5], %s1713_s7 }
 0xb16   : > { %p2203_p11 = pnand %p2210_p7, %p3694_p4 }
 0xb18   : > { %2645 = dma.done.wait (!%p2203_p11), %s1714_s13, 128  }
 0xb19   : > { %2647 = vsyncadd (!%p2203_p11), %s1714_s13, 4294967168  ;;  %s3695_s8 = sld [smem:[#allocation20_spill]]  ;;  %s3696_s21 = sld [smem:[#allocation43_spill]] }
 0xb1f   : > { %s1722_s15 = sand.u32 1, %s3695_s8   ;;  %p3697_p9 = scmp.ne.s32.totalorder %s3696_s21, 0 }
 0xb20   : > { %s1723_s1 = scalar_lea.sflag [#allocation14], %s1722_s15 }
 0xb21   : > { %p2206_p3 = pnand %p2210_p7, %p3697_p9 }
 0xb23   : > { %2649 = dma.done.wait (!%p2206_p3), %s1723_s1, 256  }
 0xb24   : > { %2651 = vsyncadd (!%p2206_p3), %s1723_s1, 4294967040  ;;  %s41_s16 = sadd.s32 1, %s3691_s23   ;;  %s3699_s18 = sld [smem:[#allocation21_spill]] }
 0xb25   : > { %p3482_p1 = scmp.ge.s32.totalorder %s41_s16, 6   ;;  %s3700_s19 = sld [smem:[#allocation22_spill]] }
 0xb26   : > { %s3701_s20 = sld [smem:[#allocation41_spill]]  ;;  %s3702_s21 = sld [smem:[#allocation23_spill]] }
 0xb27   : > { %s3703_s2 = sld [smem:[#allocation24_spill]]  ;;  %s3704_s23 = sld [smem:[#allocation34_spill]] }
 0xb28   : > { %s3705_s24 = sld [smem:[#allocation26_spill]]  ;;  %s3706_s25 = sld [smem:[#allocation27_spill]] }
 0xb29   : > { %s3707_s26 = sld [smem:[#allocation39_spill]]  ;;  %s3708_s27 = sld [smem:[#allocation30_spill]] }
 0xb2a   : > { %s3709_s28 = sld [smem:[#allocation31_spill]]  ;;  %s3710_s29 = sld [smem:[#allocation33_spill]] }
 0xb2b   : > { %s3711_s30 = sld [smem:[#allocation37_spill]]  ;;  %40 = sbr.rel (!%p3482_p1) target bundleno = 33 (0x21), region = 220 }
 0xb2d   : > { %s3713_s22 = smov %s3703_s2 }
 0xb32   :  { %1728 = vsyncpa [#allocation4], 1 }
 0xb33   :  { %1730 = vsyncpa [#allocation4 + $0x1], 1 }
 0xb34   :  { %1731 = vsyncpa [#allocation7], 1 }
 0xb35   :  { %1733 = vsyncpa [#allocation7 + $0x1], 1 }
 0xb36   :  { %1734 = vsyncpa [#allocation10], 1 }
 0xb37   :  { %1736 = vsyncpa [#allocation10 + $0x1], 1 }
 0xb38   :  { %1737 = vsyncpa [#allocation5], 1 }
 0xb39   :  { %1739 = vsyncpa [#allocation5 + $0x1], 1 }
 0xb3a   :  { %1740 = vsyncpa [#allocation14], 1 }
 0xb3b   :  { %1742 = vsyncpa [#allocation14 + $0x1], 1 }

</bundles_post_ra>
